<compile_context>
chip_gen: v7x
topology: tpu7x:2x2x1
jax: 0.10.0
libtpu: 0.0.40
codegen_flags: <defaults>
</compile_context>

<pallas_src>
import jax
import jax.numpy as jnp
import numpy as np
from jax.experimental import pallas as pl
from jax.experimental.pallas import tpu as pltpu

N, C, H, W = 2, 4, 16, 16        # batch, channels (num_features), spatial
K = 7                            # kernel_size (module default)
PAD = K // 2                     # 3
R = N * C                        # one flattened row per (n, c) slab
WP = 24                          # padded row pitch >= W + 2*PAD, chosen so H*WP = 384 = 3*128
HP = H + 2 * PAD + 1             # 23 padded rows (extra bottom row keeps every tap read in bounds)
LPAD = HP * WP                   # 552: padded frame length per row
LOUT = H * WP                    # 384: output frame length per row (lane dense)
CENTER = PAD * WP + PAD          # 75: offset of x[h=0, w=0] inside the padded frame
W_OFF = LPAD                     # 552: start of the 49 conv taps inside the packed operand
B_OFF = LPAD + K * K             # 601: bias lane
PACKED = B_OFF + 1               # 602: packed operand width

# Guard the hard-wired constants: VMEM reads are not bounds-checked, a silent shape change
# would read stale data.
assert W + 2 * PAD <= WP, "row pitch too small for the horizontal padding"
assert (K - 1) * WP + (K - 1) + LOUT <= LPAD, "max tap offset would read past the padded frame"
assert LOUT % 128 == 0, "output frame must be lane dense (multiple of 128)"
assert R % 8 == 0, "rows must fill full f32 sublane tiles"


def xunit_kernel(p_ref, o_ref):
    # p_ref: (R, PACKED) VMEM  packed [xpad(552) | w(49) | b(1)] per (n, c) row
    # o_ref: (R, LOUT)   VMEM  output in the W-padded frame (lane-dense, 3*128 wide)
    xp = p_ref[:, 0:LPAD]                        # zero-padded frame (built in the wrapper)
    x_center = xp[:, CENTER:CENTER + LOUT]       # original x aligned to the output frame
    r = jnp.maximum(xp, 0.0)                     # ReLU (relu(0)=0 keeps zero padding valid)

    # Depthwise 7x7 conv as 49 statically shifted multiply-adds in the flat frame.
    acc = p_ref[:, W_OFF:W_OFF + 1] * r[:, 0:LOUT]          # first tap initializes acc
    for t in range(1, K * K):
        ki, kj = divmod(t, K)
        off = ki * WP + kj
        acc = acc + p_ref[:, W_OFF + t:W_OFF + t + 1] * r[:, off:off + LOUT]
    z = acc + p_ref[:, B_OFF:B_OFF + 1]          # per-row bias broadcast along lanes

    a = 0.5 * jnp.tanh(0.5 * z) + 0.5            # sigmoid via a single EUP tanh (no f32 divide)
    o_ref[...] = (x_center * a).astype(o_ref.dtype)


@jax.jit
def xunit(x, w, b):
    # Build the zero-padded frame and pack everything into ONE operand -> one input DMA.
    xr = x.reshape(R, H, W)
    xpad = jnp.pad(xr, ((0, 0), (PAD, HP - H - PAD), (PAD, WP - W - PAD))).reshape(R, LPAD)
    w_rows = jnp.tile(w.reshape(C, K * K), (N, 1))          # (R, 49): row r uses channel r % C
    b_rows = jnp.tile(b, (N,)).reshape(R, 1)                # (R, 1)
    packed = jnp.concatenate([xpad, w_rows, b_rows], axis=1)  # (R, 602)

    vmem = pl.BlockSpec(memory_space=pltpu.MemorySpace.VMEM)
    out = pl.pallas_call(
        xunit_kernel,
        out_shape=jax.ShapeDtypeStruct((R, LOUT), x.dtype),
        in_specs=[vmem],
        out_specs=vmem,
    )(packed)

    # Drop the W-padding columns and restore NCHW (cheap slice; could be fused into the consumer).
    return out.reshape(N, C, H, WP)[:, :, :, :W]


def xunit_ref(x, w, b):
    """Pure-JAX reference matching the PyTorch forward (batch_norm=False)."""
    r = jnp.maximum(x, 0.0)
    z = jax.lax.conv_general_dilated(
        r, w, window_strides=(1, 1), padding=((PAD, PAD), (PAD, PAD)),
        dimension_numbers=("NCHW", "OIHW", "NCHW"), feature_group_count=C)
    z = z + b[None, :, None, None]
    a = jax.nn.sigmoid(z)
    return x * a


# TODO(synk): the batch_norm=True constructor variant (BatchNorm2d before the ReLU and
# after the conv) is not implemented; the module default (batch_norm=False) is.

if __name__ == "__main__":
    key = jax.random.PRNGKey(0)
    kx, kw, kb = jax.random.split(key, 3)

    x = jax.random.normal(kx, (N, C, H, W), jnp.float32)

    # Conv2d(C, C, 7, padding=3, groups=C) default init: U(-1/sqrt(fan_in), 1/sqrt(fan_in))
    fan_in = 1 * K * K
    bound = 1.0 / np.sqrt(fan_in)
    w = jax.random.uniform(kw, (C, 1, K, K), jnp.float32, -bound, bound)
    b = jax.random.uniform(kb, (C,), jnp.float32, -bound, bound)

    out = jax.block_until_ready(xunit(x, w, b))
    ref = xunit_ref(x, w, b)
    np.testing.assert_allclose(np.asarray(out), np.asarray(ref), rtol=1e-5, atol=1e-5)
    print("KERNEL_OK")
</pallas_src>

<mosaic_0001>
module attributes {stable_mosaic.version = 11 : i64} {
  func.func @xunit_kernel(%arg0: memref<8x602xf32, #tpu.memory_space<vmem>>, %arg1: memref<8x384xf32, #tpu.memory_space<vmem>>) attributes {dimension_semantics = [], scalar_prefetch = 0 : i64, scratch_operands = 0 : i64, tpu.core_type = #tpu.core_type<tc>} {
    %c0 = arith.constant 0 : index
    %c0_0 = arith.constant 0 : index
    %0 = vector.load %arg0[%c0, %c0_0] : memref<8x602xf32, #tpu.memory_space<vmem>>, vector<8x552xf32>
    %1 = vector.extract_strided_slice %0 {offsets = [0, 75], sizes = [8, 384], strides = [1, 1]} : vector<8x552xf32> to vector<8x384xf32>
    %cst = arith.constant 0.000000e+00 : f32
    %2 = vector.broadcast %cst : f32 to vector<8x552xf32>
    %3 = arith.maximumf %0, %2 : vector<8x552xf32>
    %c0_1 = arith.constant 0 : index
    %c552 = arith.constant 552 : index
    %4 = vector.load %arg0[%c0_1, %c552] : memref<8x602xf32, #tpu.memory_space<vmem>>, vector<8x1xf32>
    %5 = vector.extract_strided_slice %3 {offsets = [0, 0], sizes = [8, 384], strides = [1, 1]} : vector<8x552xf32> to vector<8x384xf32>
    %6 = vector.broadcast %4 : vector<8x1xf32> to vector<8x384xf32>
    %7 = arith.mulf %6, %5 : vector<8x384xf32>
    %c0_2 = arith.constant 0 : index
    %c553 = arith.constant 553 : index
    %8 = vector.load %arg0[%c0_2, %c553] : memref<8x602xf32, #tpu.memory_space<vmem>>, vector<8x1xf32>
    %9 = vector.extract_strided_slice %3 {offsets = [0, 1], sizes = [8, 384], strides = [1, 1]} : vector<8x552xf32> to vector<8x384xf32>
    %10 = vector.broadcast %8 : vector<8x1xf32> to vector<8x384xf32>
    %11 = arith.mulf %10, %9 : vector<8x384xf32>
    %12 = arith.addf %7, %11 : vector<8x384xf32>
    %c0_3 = arith.constant 0 : index
    %c554 = arith.constant 554 : index
    %13 = vector.load %arg0[%c0_3, %c554] : memref<8x602xf32, #tpu.memory_space<vmem>>, vector<8x1xf32>
    %14 = vector.extract_strided_slice %3 {offsets = [0, 2], sizes = [8, 384], strides = [1, 1]} : vector<8x552xf32> to vector<8x384xf32>
    %15 = vector.broadcast %13 : vector<8x1xf32> to vector<8x384xf32>
    %16 = arith.mulf %15, %14 : vector<8x384xf32>
    %17 = arith.addf %12, %16 : vector<8x384xf32>
    %c0_4 = arith.constant 0 : index
    %c555 = arith.constant 555 : index
    %18 = vector.load %arg0[%c0_4, %c555] : memref<8x602xf32, #tpu.memory_space<vmem>>, vector<8x1xf32>
    %19 = vector.extract_strided_slice %3 {offsets = [0, 3], sizes = [8, 384], strides = [1, 1]} : vector<8x552xf32> to vector<8x384xf32>
    %20 = vector.broadcast %18 : vector<8x1xf32> to vector<8x384xf32>
    %21 = arith.mulf %20, %19 : vector<8x384xf32>
    %22 = arith.addf %17, %21 : vector<8x384xf32>
    %c0_5 = arith.constant 0 : index
    %c556 = arith.constant 556 : index
    %23 = vector.load %arg0[%c0_5, %c556] : memref<8x602xf32, #tpu.memory_space<vmem>>, vector<8x1xf32>
    %24 = vector.extract_strided_slice %3 {offsets = [0, 4], sizes = [8, 384], strides = [1, 1]} : vector<8x552xf32> to vector<8x384xf32>
    %25 = vector.broadcast %23 : vector<8x1xf32> to vector<8x384xf32>
    %26 = arith.mulf %25, %24 : vector<8x384xf32>
    %27 = arith.addf %22, %26 : vector<8x384xf32>
    %c0_6 = arith.constant 0 : index
    %c557 = arith.constant 557 : index
    %28 = vector.load %arg0[%c0_6, %c557] : memref<8x602xf32, #tpu.memory_space<vmem>>, vector<8x1xf32>
    %29 = vector.extract_strided_slice %3 {offsets = [0, 5], sizes = [8, 384], strides = [1, 1]} : vector<8x552xf32> to vector<8x384xf32>
    %30 = vector.broadcast %28 : vector<8x1xf32> to vector<8x384xf32>
    %31 = arith.mulf %30, %29 : vector<8x384xf32>
    %32 = arith.addf %27, %31 : vector<8x384xf32>
    %c0_7 = arith.constant 0 : index
    %c558 = arith.constant 558 : index
    %33 = vector.load %arg0[%c0_7, %c558] : memref<8x602xf32, #tpu.memory_space<vmem>>, vector<8x1xf32>
    %34 = vector.extract_strided_slice %3 {offsets = [0, 6], sizes = [8, 384], strides = [1, 1]} : vector<8x552xf32> to vector<8x384xf32>
    %35 = vector.broadcast %33 : vector<8x1xf32> to vector<8x384xf32>
    %36 = arith.mulf %35, %34 : vector<8x384xf32>
    %37 = arith.addf %32, %36 : vector<8x384xf32>
    %c0_8 = arith.constant 0 : index
    %c559 = arith.constant 559 : index
    %38 = vector.load %arg0[%c0_8, %c559] : memref<8x602xf32, #tpu.memory_space<vmem>>, vector<8x1xf32>
    %39 = vector.extract_strided_slice %3 {offsets = [0, 24], sizes = [8, 384], strides = [1, 1]} : vector<8x552xf32> to vector<8x384xf32>
    %40 = vector.broadcast %38 : vector<8x1xf32> to vector<8x384xf32>
    %41 = arith.mulf %40, %39 : vector<8x384xf32>
    %42 = arith.addf %37, %41 : vector<8x384xf32>
    %c0_9 = arith.constant 0 : index
    %c560 = arith.constant 560 : index
    %43 = vector.load %arg0[%c0_9, %c560] : memref<8x602xf32, #tpu.memory_space<vmem>>, vector<8x1xf32>
    %44 = vector.extract_strided_slice %3 {offsets = [0, 25], sizes = [8, 384], strides = [1, 1]} : vector<8x552xf32> to vector<8x384xf32>
    %45 = vector.broadcast %43 : vector<8x1xf32> to vector<8x384xf32>
    %46 = arith.mulf %45, %44 : vector<8x384xf32>
    %47 = arith.addf %42, %46 : vector<8x384xf32>
    %c0_10 = arith.constant 0 : index
    %c561 = arith.constant 561 : index
    %48 = vector.load %arg0[%c0_10, %c561] : memref<8x602xf32, #tpu.memory_space<vmem>>, vector<8x1xf32>
    %49 = vector.extract_strided_slice %3 {offsets = [0, 26], sizes = [8, 384], strides = [1, 1]} : vector<8x552xf32> to vector<8x384xf32>
    %50 = vector.broadcast %48 : vector<8x1xf32> to vector<8x384xf32>
    %51 = arith.mulf %50, %49 : vector<8x384xf32>
    %52 = arith.addf %47, %51 : vector<8x384xf32>
    %c0_11 = arith.constant 0 : index
    %c562 = arith.constant 562 : index
    %53 = vector.load %arg0[%c0_11, %c562] : memref<8x602xf32, #tpu.memory_space<vmem>>, vector<8x1xf32>
    %54 = vector.extract_strided_slice %3 {offsets = [0, 27], sizes = [8, 384], strides = [1, 1]} : vector<8x552xf32> to vector<8x384xf32>
    %55 = vector.broadcast %53 : vector<8x1xf32> to vector<8x384xf32>
    %56 = arith.mulf %55, %54 : vector<8x384xf32>
    %57 = arith.addf %52, %56 : vector<8x384xf32>
    %c0_12 = arith.constant 0 : index
    %c563 = arith.constant 563 : index
    %58 = vector.load %arg0[%c0_12, %c563] : memref<8x602xf32, #tpu.memory_space<vmem>>, vector<8x1xf32>
    %59 = vector.extract_strided_slice %3 {offsets = [0, 28], sizes = [8, 384], strides = [1, 1]} : vector<8x552xf32> to vector<8x384xf32>
    %60 = vector.broadcast %58 : vector<8x1xf32> to vector<8x384xf32>
    %61 = arith.mulf %60, %59 : vector<8x384xf32>
    %62 = arith.addf %57, %61 : vector<8x384xf32>
    %c0_13 = arith.constant 0 : index
    %c564 = arith.constant 564 : index
    %63 = vector.load %arg0[%c0_13, %c564] : memref<8x602xf32, #tpu.memory_space<vmem>>, vector<8x1xf32>
    %64 = vector.extract_strided_slice %3 {offsets = [0, 29], sizes = [8, 384], strides = [1, 1]} : vector<8x552xf32> to vector<8x384xf32>
    %65 = vector.broadcast %63 : vector<8x1xf32> to vector<8x384xf32>
    %66 = arith.mulf %65, %64 : vector<8x384xf32>
    %67 = arith.addf %62, %66 : vector<8x384xf32>
    %c0_14 = arith.constant 0 : index
    %c565 = arith.constant 565 : index
    %68 = vector.load %arg0[%c0_14, %c565] : memref<8x602xf32, #tpu.memory_space<vmem>>, vector<8x1xf32>
    %69 = vector.extract_strided_slice %3 {offsets = [0, 30], sizes = [8, 384], strides = [1, 1]} : vector<8x552xf32> to vector<8x384xf32>
    %70 = vector.broadcast %68 : vector<8x1xf32> to vector<8x384xf32>
    %71 = arith.mulf %70, %69 : vector<8x384xf32>
    %72 = arith.addf %67, %71 : vector<8x384xf32>
    %c0_15 = arith.constant 0 : index
    %c566 = arith.constant 566 : index
    %73 = vector.load %arg0[%c0_15, %c566] : memref<8x602xf32, #tpu.memory_space<vmem>>, vector<8x1xf32>
    %74 = vector.extract_strided_slice %3 {offsets = [0, 48], sizes = [8, 384], strides = [1, 1]} : vector<8x552xf32> to vector<8x384xf32>
    %75 = vector.broadcast %73 : vector<8x1xf32> to vector<8x384xf32>
    %76 = arith.mulf %75, %74 : vector<8x384xf32>
    %77 = arith.addf %72, %76 : vector<8x384xf32>
    %c0_16 = arith.constant 0 : index
    %c567 = arith.constant 567 : index
    %78 = vector.load %arg0[%c0_16, %c567] : memref<8x602xf32, #tpu.memory_space<vmem>>, vector<8x1xf32>
    %79 = vector.extract_strided_slice %3 {offsets = [0, 49], sizes = [8, 384], strides = [1, 1]} : vector<8x552xf32> to vector<8x384xf32>
    %80 = vector.broadcast %78 : vector<8x1xf32> to vector<8x384xf32>
    %81 = arith.mulf %80, %79 : vector<8x384xf32>
    %82 = arith.addf %77, %81 : vector<8x384xf32>
    %c0_17 = arith.constant 0 : index
    %c568 = arith.constant 568 : index
    %83 = vector.load %arg0[%c0_17, %c568] : memref<8x602xf32, #tpu.memory_space<vmem>>, vector<8x1xf32>
    %84 = vector.extract_strided_slice %3 {offsets = [0, 50], sizes = [8, 384], strides = [1, 1]} : vector<8x552xf32> to vector<8x384xf32>
    %85 = vector.broadcast %83 : vector<8x1xf32> to vector<8x384xf32>
    %86 = arith.mulf %85, %84 : vector<8x384xf32>
    %87 = arith.addf %82, %86 : vector<8x384xf32>
    %c0_18 = arith.constant 0 : index
    %c569 = arith.constant 569 : index
    %88 = vector.load %arg0[%c0_18, %c569] : memref<8x602xf32, #tpu.memory_space<vmem>>, vector<8x1xf32>
    %89 = vector.extract_strided_slice %3 {offsets = [0, 51], sizes = [8, 384], strides = [1, 1]} : vector<8x552xf32> to vector<8x384xf32>
    %90 = vector.broadcast %88 : vector<8x1xf32> to vector<8x384xf32>
    %91 = arith.mulf %90, %89 : vector<8x384xf32>
    %92 = arith.addf %87, %91 : vector<8x384xf32>
    %c0_19 = arith.constant 0 : index
    %c570 = arith.constant 570 : index
    %93 = vector.load %arg0[%c0_19, %c570] : memref<8x602xf32, #tpu.memory_space<vmem>>, vector<8x1xf32>
    %94 = vector.extract_strided_slice %3 {offsets = [0, 52], sizes = [8, 384], strides = [1, 1]} : vector<8x552xf32> to vector<8x384xf32>
    %95 = vector.broadcast %93 : vector<8x1xf32> to vector<8x384xf32>
    %96 = arith.mulf %95, %94 : vector<8x384xf32>
    %97 = arith.addf %92, %96 : vector<8x384xf32>
    %c0_20 = arith.constant 0 : index
    %c571 = arith.constant 571 : index
    %98 = vector.load %arg0[%c0_20, %c571] : memref<8x602xf32, #tpu.memory_space<vmem>>, vector<8x1xf32>
    %99 = vector.extract_strided_slice %3 {offsets = [0, 53], sizes = [8, 384], strides = [1, 1]} : vector<8x552xf32> to vector<8x384xf32>
    %100 = vector.broadcast %98 : vector<8x1xf32> to vector<8x384xf32>
    %101 = arith.mulf %100, %99 : vector<8x384xf32>
    %102 = arith.addf %97, %101 : vector<8x384xf32>
    %c0_21 = arith.constant 0 : index
    %c572 = arith.constant 572 : index
    %103 = vector.load %arg0[%c0_21, %c572] : memref<8x602xf32, #tpu.memory_space<vmem>>, vector<8x1xf32>
    %104 = vector.extract_strided_slice %3 {offsets = [0, 54], sizes = [8, 384], strides = [1, 1]} : vector<8x552xf32> to vector<8x384xf32>
    %105 = vector.broadcast %103 : vector<8x1xf32> to vector<8x384xf32>
    %106 = arith.mulf %105, %104 : vector<8x384xf32>
    %107 = arith.addf %102, %106 : vector<8x384xf32>
    %c0_22 = arith.constant 0 : index
    %c573 = arith.constant 573 : index
    %108 = vector.load %arg0[%c0_22, %c573] : memref<8x602xf32, #tpu.memory_space<vmem>>, vector<8x1xf32>
    %109 = vector.extract_strided_slice %3 {offsets = [0, 72], sizes = [8, 384], strides = [1, 1]} : vector<8x552xf32> to vector<8x384xf32>
    %110 = vector.broadcast %108 : vector<8x1xf32> to vector<8x384xf32>
    %111 = arith.mulf %110, %109 : vector<8x384xf32>
    %112 = arith.addf %107, %111 : vector<8x384xf32>
    %c0_23 = arith.constant 0 : index
    %c574 = arith.constant 574 : index
    %113 = vector.load %arg0[%c0_23, %c574] : memref<8x602xf32, #tpu.memory_space<vmem>>, vector<8x1xf32>
    %114 = vector.extract_strided_slice %3 {offsets = [0, 73], sizes = [8, 384], strides = [1, 1]} : vector<8x552xf32> to vector<8x384xf32>
    %115 = vector.broadcast %113 : vector<8x1xf32> to vector<8x384xf32>
    %116 = arith.mulf %115, %114 : vector<8x384xf32>
    %117 = arith.addf %112, %116 : vector<8x384xf32>
    %c0_24 = arith.constant 0 : index
    %c575 = arith.constant 575 : index
    %118 = vector.load %arg0[%c0_24, %c575] : memref<8x602xf32, #tpu.memory_space<vmem>>, vector<8x1xf32>
    %119 = vector.extract_strided_slice %3 {offsets = [0, 74], sizes = [8, 384], strides = [1, 1]} : vector<8x552xf32> to vector<8x384xf32>
    %120 = vector.broadcast %118 : vector<8x1xf32> to vector<8x384xf32>
    %121 = arith.mulf %120, %119 : vector<8x384xf32>
    %122 = arith.addf %117, %121 : vector<8x384xf32>
    %c0_25 = arith.constant 0 : index
    %c576 = arith.constant 576 : index
    %123 = vector.load %arg0[%c0_25, %c576] : memref<8x602xf32, #tpu.memory_space<vmem>>, vector<8x1xf32>
    %124 = vector.extract_strided_slice %3 {offsets = [0, 75], sizes = [8, 384], strides = [1, 1]} : vector<8x552xf32> to vector<8x384xf32>
    %125 = vector.broadcast %123 : vector<8x1xf32> to vector<8x384xf32>
    %126 = arith.mulf %125, %124 : vector<8x384xf32>
    %127 = arith.addf %122, %126 : vector<8x384xf32>
    %c0_26 = arith.constant 0 : index
    %c577 = arith.constant 577 : index
    %128 = vector.load %arg0[%c0_26, %c577] : memref<8x602xf32, #tpu.memory_space<vmem>>, vector<8x1xf32>
    %129 = vector.extract_strided_slice %3 {offsets = [0, 76], sizes = [8, 384], strides = [1, 1]} : vector<8x552xf32> to vector<8x384xf32>
    %130 = vector.broadcast %128 : vector<8x1xf32> to vector<8x384xf32>
    %131 = arith.mulf %130, %129 : vector<8x384xf32>
    %132 = arith.addf %127, %131 : vector<8x384xf32>
    %c0_27 = arith.constant 0 : index
    %c578 = arith.constant 578 : index
    %133 = vector.load %arg0[%c0_27, %c578] : memref<8x602xf32, #tpu.memory_space<vmem>>, vector<8x1xf32>
    %134 = vector.extract_strided_slice %3 {offsets = [0, 77], sizes = [8, 384], strides = [1, 1]} : vector<8x552xf32> to vector<8x384xf32>
    %135 = vector.broadcast %133 : vector<8x1xf32> to vector<8x384xf32>
    %136 = arith.mulf %135, %134 : vector<8x384xf32>
    %137 = arith.addf %132, %136 : vector<8x384xf32>
    %c0_28 = arith.constant 0 : index
    %c579 = arith.constant 579 : index
    %138 = vector.load %arg0[%c0_28, %c579] : memref<8x602xf32, #tpu.memory_space<vmem>>, vector<8x1xf32>
    %139 = vector.extract_strided_slice %3 {offsets = [0, 78], sizes = [8, 384], strides = [1, 1]} : vector<8x552xf32> to vector<8x384xf32>
    %140 = vector.broadcast %138 : vector<8x1xf32> to vector<8x384xf32>
    %141 = arith.mulf %140, %139 : vector<8x384xf32>
    %142 = arith.addf %137, %141 : vector<8x384xf32>
    %c0_29 = arith.constant 0 : index
    %c580 = arith.constant 580 : index
    %143 = vector.load %arg0[%c0_29, %c580] : memref<8x602xf32, #tpu.memory_space<vmem>>, vector<8x1xf32>
    %144 = vector.extract_strided_slice %3 {offsets = [0, 96], sizes = [8, 384], strides = [1, 1]} : vector<8x552xf32> to vector<8x384xf32>
    %145 = vector.broadcast %143 : vector<8x1xf32> to vector<8x384xf32>
    %146 = arith.mulf %145, %144 : vector<8x384xf32>
    %147 = arith.addf %142, %146 : vector<8x384xf32>
    %c0_30 = arith.constant 0 : index
    %c581 = arith.constant 581 : index
    %148 = vector.load %arg0[%c0_30, %c581] : memref<8x602xf32, #tpu.memory_space<vmem>>, vector<8x1xf32>
    %149 = vector.extract_strided_slice %3 {offsets = [0, 97], sizes = [8, 384], strides = [1, 1]} : vector<8x552xf32> to vector<8x384xf32>
    %150 = vector.broadcast %148 : vector<8x1xf32> to vector<8x384xf32>
    %151 = arith.mulf %150, %149 : vector<8x384xf32>
    %152 = arith.addf %147, %151 : vector<8x384xf32>
    %c0_31 = arith.constant 0 : index
    %c582 = arith.constant 582 : index
    %153 = vector.load %arg0[%c0_31, %c582] : memref<8x602xf32, #tpu.memory_space<vmem>>, vector<8x1xf32>
    %154 = vector.extract_strided_slice %3 {offsets = [0, 98], sizes = [8, 384], strides = [1, 1]} : vector<8x552xf32> to vector<8x384xf32>
    %155 = vector.broadcast %153 : vector<8x1xf32> to vector<8x384xf32>
    %156 = arith.mulf %155, %154 : vector<8x384xf32>
    %157 = arith.addf %152, %156 : vector<8x384xf32>
    %c0_32 = arith.constant 0 : index
    %c583 = arith.constant 583 : index
    %158 = vector.load %arg0[%c0_32, %c583] : memref<8x602xf32, #tpu.memory_space<vmem>>, vector<8x1xf32>
    %159 = vector.extract_strided_slice %3 {offsets = [0, 99], sizes = [8, 384], strides = [1, 1]} : vector<8x552xf32> to vector<8x384xf32>
    %160 = vector.broadcast %158 : vector<8x1xf32> to vector<8x384xf32>
    %161 = arith.mulf %160, %159 : vector<8x384xf32>
    %162 = arith.addf %157, %161 : vector<8x384xf32>
    %c0_33 = arith.constant 0 : index
    %c584 = arith.constant 584 : index
    %163 = vector.load %arg0[%c0_33, %c584] : memref<8x602xf32, #tpu.memory_space<vmem>>, vector<8x1xf32>
    %164 = vector.extract_strided_slice %3 {offsets = [0, 100], sizes = [8, 384], strides = [1, 1]} : vector<8x552xf32> to vector<8x384xf32>
    %165 = vector.broadcast %163 : vector<8x1xf32> to vector<8x384xf32>
    %166 = arith.mulf %165, %164 : vector<8x384xf32>
    %167 = arith.addf %162, %166 : vector<8x384xf32>
    %c0_34 = arith.constant 0 : index
    %c585 = arith.constant 585 : index
    %168 = vector.load %arg0[%c0_34, %c585] : memref<8x602xf32, #tpu.memory_space<vmem>>, vector<8x1xf32>
    %169 = vector.extract_strided_slice %3 {offsets = [0, 101], sizes = [8, 384], strides = [1, 1]} : vector<8x552xf32> to vector<8x384xf32>
    %170 = vector.broadcast %168 : vector<8x1xf32> to vector<8x384xf32>
    %171 = arith.mulf %170, %169 : vector<8x384xf32>
    %172 = arith.addf %167, %171 : vector<8x384xf32>
    %c0_35 = arith.constant 0 : index
    %c586 = arith.constant 586 : index
    %173 = vector.load %arg0[%c0_35, %c586] : memref<8x602xf32, #tpu.memory_space<vmem>>, vector<8x1xf32>
    %174 = vector.extract_strided_slice %3 {offsets = [0, 102], sizes = [8, 384], strides = [1, 1]} : vector<8x552xf32> to vector<8x384xf32>
    %175 = vector.broadcast %173 : vector<8x1xf32> to vector<8x384xf32>
    %176 = arith.mulf %175, %174 : vector<8x384xf32>
    %177 = arith.addf %172, %176 : vector<8x384xf32>
    %c0_36 = arith.constant 0 : index
    %c587 = arith.constant 587 : index
    %178 = vector.load %arg0[%c0_36, %c587] : memref<8x602xf32, #tpu.memory_space<vmem>>, vector<8x1xf32>
    %179 = vector.extract_strided_slice %3 {offsets = [0, 120], sizes = [8, 384], strides = [1, 1]} : vector<8x552xf32> to vector<8x384xf32>
    %180 = vector.broadcast %178 : vector<8x1xf32> to vector<8x384xf32>
    %181 = arith.mulf %180, %179 : vector<8x384xf32>
    %182 = arith.addf %177, %181 : vector<8x384xf32>
    %c0_37 = arith.constant 0 : index
    %c588 = arith.constant 588 : index
    %183 = vector.load %arg0[%c0_37, %c588] : memref<8x602xf32, #tpu.memory_space<vmem>>, vector<8x1xf32>
    %184 = vector.extract_strided_slice %3 {offsets = [0, 121], sizes = [8, 384], strides = [1, 1]} : vector<8x552xf32> to vector<8x384xf32>
    %185 = vector.broadcast %183 : vector<8x1xf32> to vector<8x384xf32>
    %186 = arith.mulf %185, %184 : vector<8x384xf32>
    %187 = arith.addf %182, %186 : vector<8x384xf32>
    %c0_38 = arith.constant 0 : index
    %c589 = arith.constant 589 : index
    %188 = vector.load %arg0[%c0_38, %c589] : memref<8x602xf32, #tpu.memory_space<vmem>>, vector<8x1xf32>
    %189 = vector.extract_strided_slice %3 {offsets = [0, 122], sizes = [8, 384], strides = [1, 1]} : vector<8x552xf32> to vector<8x384xf32>
    %190 = vector.broadcast %188 : vector<8x1xf32> to vector<8x384xf32>
    %191 = arith.mulf %190, %189 : vector<8x384xf32>
    %192 = arith.addf %187, %191 : vector<8x384xf32>
    %c0_39 = arith.constant 0 : index
    %c590 = arith.constant 590 : index
    %193 = vector.load %arg0[%c0_39, %c590] : memref<8x602xf32, #tpu.memory_space<vmem>>, vector<8x1xf32>
    %194 = vector.extract_strided_slice %3 {offsets = [0, 123], sizes = [8, 384], strides = [1, 1]} : vector<8x552xf32> to vector<8x384xf32>
    %195 = vector.broadcast %193 : vector<8x1xf32> to vector<8x384xf32>
    %196 = arith.mulf %195, %194 : vector<8x384xf32>
    %197 = arith.addf %192, %196 : vector<8x384xf32>
    %c0_40 = arith.constant 0 : index
    %c591 = arith.constant 591 : index
    %198 = vector.load %arg0[%c0_40, %c591] : memref<8x602xf32, #tpu.memory_space<vmem>>, vector<8x1xf32>
    %199 = vector.extract_strided_slice %3 {offsets = [0, 124], sizes = [8, 384], strides = [1, 1]} : vector<8x552xf32> to vector<8x384xf32>
    %200 = vector.broadcast %198 : vector<8x1xf32> to vector<8x384xf32>
    %201 = arith.mulf %200, %199 : vector<8x384xf32>
    %202 = arith.addf %197, %201 : vector<8x384xf32>
    %c0_41 = arith.constant 0 : index
    %c592 = arith.constant 592 : index
    %203 = vector.load %arg0[%c0_41, %c592] : memref<8x602xf32, #tpu.memory_space<vmem>>, vector<8x1xf32>
    %204 = vector.extract_strided_slice %3 {offsets = [0, 125], sizes = [8, 384], strides = [1, 1]} : vector<8x552xf32> to vector<8x384xf32>
    %205 = vector.broadcast %203 : vector<8x1xf32> to vector<8x384xf32>
    %206 = arith.mulf %205, %204 : vector<8x384xf32>
    %207 = arith.addf %202, %206 : vector<8x384xf32>
    %c0_42 = arith.constant 0 : index
    %c593 = arith.constant 593 : index
    %208 = vector.load %arg0[%c0_42, %c593] : memref<8x602xf32, #tpu.memory_space<vmem>>, vector<8x1xf32>
    %209 = vector.extract_strided_slice %3 {offsets = [0, 126], sizes = [8, 384], strides = [1, 1]} : vector<8x552xf32> to vector<8x384xf32>
    %210 = vector.broadcast %208 : vector<8x1xf32> to vector<8x384xf32>
    %211 = arith.mulf %210, %209 : vector<8x384xf32>
    %212 = arith.addf %207, %211 : vector<8x384xf32>
    %c0_43 = arith.constant 0 : index
    %c594 = arith.constant 594 : index
    %213 = vector.load %arg0[%c0_43, %c594] : memref<8x602xf32, #tpu.memory_space<vmem>>, vector<8x1xf32>
    %214 = vector.extract_strided_slice %3 {offsets = [0, 144], sizes = [8, 384], strides = [1, 1]} : vector<8x552xf32> to vector<8x384xf32>
    %215 = vector.broadcast %213 : vector<8x1xf32> to vector<8x384xf32>
    %216 = arith.mulf %215, %214 : vector<8x384xf32>
    %217 = arith.addf %212, %216 : vector<8x384xf32>
    %c0_44 = arith.constant 0 : index
    %c595 = arith.constant 595 : index
    %218 = vector.load %arg0[%c0_44, %c595] : memref<8x602xf32, #tpu.memory_space<vmem>>, vector<8x1xf32>
    %219 = vector.extract_strided_slice %3 {offsets = [0, 145], sizes = [8, 384], strides = [1, 1]} : vector<8x552xf32> to vector<8x384xf32>
    %220 = vector.broadcast %218 : vector<8x1xf32> to vector<8x384xf32>
    %221 = arith.mulf %220, %219 : vector<8x384xf32>
    %222 = arith.addf %217, %221 : vector<8x384xf32>
    %c0_45 = arith.constant 0 : index
    %c596 = arith.constant 596 : index
    %223 = vector.load %arg0[%c0_45, %c596] : memref<8x602xf32, #tpu.memory_space<vmem>>, vector<8x1xf32>
    %224 = vector.extract_strided_slice %3 {offsets = [0, 146], sizes = [8, 384], strides = [1, 1]} : vector<8x552xf32> to vector<8x384xf32>
    %225 = vector.broadcast %223 : vector<8x1xf32> to vector<8x384xf32>
    %226 = arith.mulf %225, %224 : vector<8x384xf32>
    %227 = arith.addf %222, %226 : vector<8x384xf32>
    %c0_46 = arith.constant 0 : index
    %c597 = arith.constant 597 : index
    %228 = vector.load %arg0[%c0_46, %c597] : memref<8x602xf32, #tpu.memory_space<vmem>>, vector<8x1xf32>
    %229 = vector.extract_strided_slice %3 {offsets = [0, 147], sizes = [8, 384], strides = [1, 1]} : vector<8x552xf32> to vector<8x384xf32>
    %230 = vector.broadcast %228 : vector<8x1xf32> to vector<8x384xf32>
    %231 = arith.mulf %230, %229 : vector<8x384xf32>
    %232 = arith.addf %227, %231 : vector<8x384xf32>
    %c0_47 = arith.constant 0 : index
    %c598 = arith.constant 598 : index
    %233 = vector.load %arg0[%c0_47, %c598] : memref<8x602xf32, #tpu.memory_space<vmem>>, vector<8x1xf32>
    %234 = vector.extract_strided_slice %3 {offsets = [0, 148], sizes = [8, 384], strides = [1, 1]} : vector<8x552xf32> to vector<8x384xf32>
    %235 = vector.broadcast %233 : vector<8x1xf32> to vector<8x384xf32>
    %236 = arith.mulf %235, %234 : vector<8x384xf32>
    %237 = arith.addf %232, %236 : vector<8x384xf32>
    %c0_48 = arith.constant 0 : index
    %c599 = arith.constant 599 : index
    %238 = vector.load %arg0[%c0_48, %c599] : memref<8x602xf32, #tpu.memory_space<vmem>>, vector<8x1xf32>
    %239 = vector.extract_strided_slice %3 {offsets = [0, 149], sizes = [8, 384], strides = [1, 1]} : vector<8x552xf32> to vector<8x384xf32>
    %240 = vector.broadcast %238 : vector<8x1xf32> to vector<8x384xf32>
    %241 = arith.mulf %240, %239 : vector<8x384xf32>
    %242 = arith.addf %237, %241 : vector<8x384xf32>
    %c0_49 = arith.constant 0 : index
    %c600 = arith.constant 600 : index
    %243 = vector.load %arg0[%c0_49, %c600] : memref<8x602xf32, #tpu.memory_space<vmem>>, vector<8x1xf32>
    %244 = vector.extract_strided_slice %3 {offsets = [0, 150], sizes = [8, 384], strides = [1, 1]} : vector<8x552xf32> to vector<8x384xf32>
    %245 = vector.broadcast %243 : vector<8x1xf32> to vector<8x384xf32>
    %246 = arith.mulf %245, %244 : vector<8x384xf32>
    %247 = arith.addf %242, %246 : vector<8x384xf32>
    %c0_50 = arith.constant 0 : index
    %c601 = arith.constant 601 : index
    %248 = vector.load %arg0[%c0_50, %c601] : memref<8x602xf32, #tpu.memory_space<vmem>>, vector<8x1xf32>
    %249 = vector.broadcast %248 : vector<8x1xf32> to vector<8x384xf32>
    %250 = arith.addf %247, %249 : vector<8x384xf32>
    %cst_51 = arith.constant 5.000000e-01 : f32
    %251 = vector.broadcast %cst_51 : f32 to vector<8x384xf32>
    %252 = arith.mulf %251, %250 : vector<8x384xf32>
    %253 = math.tanh %252 : vector<8x384xf32>
    %cst_52 = arith.constant 5.000000e-01 : f32
    %254 = vector.broadcast %cst_52 : f32 to vector<8x384xf32>
    %255 = arith.mulf %254, %253 : vector<8x384xf32>
    %cst_53 = arith.constant 5.000000e-01 : f32
    %256 = vector.broadcast %cst_53 : f32 to vector<8x384xf32>
    %257 = arith.addf %255, %256 : vector<8x384xf32>
    %258 = arith.mulf %1, %257 : vector<8x384xf32>
    %c0_54 = arith.constant 0 : index
    %c0_55 = arith.constant 0 : index
    %259 = vector.load %arg1[%c0_54, %c0_55] : memref<8x384xf32, #tpu.memory_space<vmem>>, vector<8x384xf32>
    tpu.vector_store %arg1[%c0_54, %c0_55], %258 {strides = array<i32>} : memref<8x384xf32, #tpu.memory_space<vmem>>, vector<8x384xf32>,
    return
  }
}

</mosaic_0001>

<bundles_post_ra>
// kernel: tile.0
= control target key start
LH: loop header
LB: loop body
LE: loop exit
PB: predicated region body
PF: predicated region fallthrough
CT: control target
= control target key end

     0   :  { %s34_s8 = smov 125   ;;  %vm7_vm0 = vcmask 7168   ;;  %s35_s11 = smov 126   ;;  %s61_s0 = inlined_call_operand.vmem [shape: f32[2,4], index: 0, kind: input, shape index: {}]   ;;  %s62_s1 = inlined_call_operand.vmem [shape: f32[8,1], index: 1, kind: output, shape index: {}]  }
   0x1   :  { %v4_v0 = vld [vmem:[%s61_s0] sm:$0x3]  ;;  %s33_s0 = smov 127  }
   0x2   :  { %5 = vst [vmem:[#allocation0] sm:$0x3] %v4_v0 }
   0x9   :  { %v9_v1 = vld [vmem:[#allocation0] sm:$0x3]  }
   0xa   :  { %v21_v2 = vld [vmem:[#allocation0] sm:$0x3]   ;;  %10 = vrot.lane.b32.xlu0 %v9_v1, %s33_s0 }
   0xb   :  { %22 = vrot.lane.b32.xlu1 %v21_v2, %s34_s8  ;;  %v6_v3 = vld [vmem:[#allocation0] sm:$0x3]  }
   0xc   :  { %v15_v4 = vld [vmem:[#allocation0] sm:$0x3]   ;;  %8 = vst.msk [vmem:[%s62_s1] ss:$4 sm:$0x3] %vm7_vm0, %v6_v3  }
   0xe   :  { %16 = vrot.lane.b32.xlu0 %v15_v4, %s35_s11 }
  0x7c   :  { %v11_v5 = vpop.permute.xlu0 %10  }
  0x7d   :  { %v23_v6 = vpop.permute.xlu1 %22   ;;  %27 = vst.msk [vmem:[%s62_s1 + $0x1] ss:$4 sm:$0x3] %vm7_vm0, %v11_v5  }
  0x7e   :  { %29 = vst.msk [vmem:[%s62_s1 + $0x3] ss:$4 sm:$0x3] %vm7_vm0, %v23_v6  }
  0x80   :  { %v17_v7 = vpop.permute.xlu0 %16  }
  0x81   :  { %28 = vst.msk [vmem:[%s62_s1 + $0x2] ss:$4 sm:$0x3] %vm7_vm0, %v17_v7  }

// kernel: tile.16
= control target key start
LH: loop header
LB: loop body
LE: loop exit
PB: predicated region body
PF: predicated region fallthrough
CT: control target
= control target key end

     0   :  { %s22_s0 = inlined_call_operand.vmem [shape: f32[4], index: 0, kind: input, shape index: {}]   ;;  %s23_s1 = inlined_call_operand.vmem [shape: f32[2,4], index: 1, kind: output, shape index: {}]  }
   0x1   :  { %v4_v0 = vld [vmem:[%s22_s0] ss:$0 sm:$0xff] }
   0x2   :  { %5 = vst [vmem:[%s23_s1] sm:$0x3] %v4_v0 }

// kernel: xunit.1
= control target key start
LH: loop header
LB: loop body
LE: loop exit
PB: predicated region body
PF: predicated region fallthrough
CT: control target
= control target key end

     0   :  { %v1688_v0 = vmov 40   ;;  %v1689_v2 = vmov 42   ;;  %v1690_v3 = vmov 41   ;;  %v1691_v4 = vmov 43   ;;  %s1701_s14 = smov 127   ;;  %s1702_s17 = smov 126   ;;  %s2682_s0 = inlined_call_operand.vmem [shape: f32[8,602], index: 0, kind: input, shape index: {}]   ;;  %s2683_s1 = inlined_call_operand.vmem [shape: f32[8,384], index: 1, kind: output, shape index: {}]  }
   0x1   :  { %1627 = vset.pattern.permute.xlu0 %v1688_v0  ;;  %v1799_v1 = vld [vmem:[%s2682_s0 + $0x20] sm:$0xff]  ;;  %1629 = vset.pattern.permute.xlu1 %v1689_v2  ;;  %v1692_v5 = vmov 44   ;;  %v1693_v6 = vmov 45   ;;  %v1694_v7 = vmov 46   ;;  %v1695_v8 = vmov 47   ;;  %v11_v14 = vld [vmem:[%s2682_s0 + $0x18] sm:$0xff] }
   0x2   :  { %20 = vperm.xlu0 %1627, %v1799_v1   ;;  %57 = vperm.xlu1 %1629, %v1799_v1   ;;  %v1696_v9 = vmov 48   ;;  %v1697_v10 = vmov 49   ;;  %v1698_v11 = vmov 50   ;;  %v1699_v12 = vmov 51   ;;  %v8_v16 = vld [vmem:[%s2682_s0] sm:$0xff]  ;;  %v9_v19 = vld [vmem:[%s2682_s0 + $0x8] sm:$0xff] }
   0x3   :  { %v1700_v13 = vmov 52   ;;  %v1821_v17 = vmax.f32 %v11_v14, 0.0  ;;  %v1823_v18 = vmax.f32 %v8_v16, 0.0  ;;  %v1830_v24 = vmax.f32 %v9_v19, 0.0  ;;  %v10_v26 = vld [vmem:[%s2682_s0 + $0x10] sm:$0xff]  ;;  %s1703_s18 = smov 125  }
   0x4   :  { %v1837_v29 = vmax.f32 %v10_v26, 0.0  ;;  %s1704_s19 = smov 124   ;;  %s1705_s20 = smov 123   ;;  %v1712_v60 = vmov 53   ;;  %vm46_vm0 = vcmask 1039360   ;;  %vm76_vm1 = vcmask 1031168  }
   0x5   :  { %s1706_s21 = smov 122   ;;  %s1707_s22 = smov 104   ;;  %vm106_vm2 = vcmask 1022976   ;;  %vm136_vm3 = vcmask 1014784   ;;  %vm166_vm4 = vcmask 1006592   ;;  %vm196_vm5 = vcmask 998400  }
   0x6   :  { %1628 = vset.pattern.permute.xlu0 %v1690_v3  ;;  %s1708_s23 = smov 103   ;;  %s1709_s24 = smov 102   ;;  %vm226_vm6 = vcmask 850944   ;;  %vm256_vm7 = vcmask 842752   ;;  %vm286_vm8 = vcmask 834560   ;;  %vm316_vm9 = vcmask 826368  }
   0x7   :  { %27 = vperm.xlu0 %1628, %v1799_v1   ;;  %s1710_s25 = smov 101   ;;  %s1711_s26 = smov 100   ;;  %vm346_vm10 = vcmask 818176   ;;  %vm376_vm11 = vcmask 809984   ;;  %vm406_vm12 = vcmask 801792   ;;  %vm436_vm13 = vcmask 654336  }
   0x8   :  { %s1713_s27 = smov 99   ;;  %s1715_s28 = smov 98   ;;  %vm466_vm14 = vcmask 646144   ;;  %vm496_vm15 = vcmask 637952  }
   0x9   :  { %s1717_s29 = smov 80   ;;  %s1719_s30 = smov 79  }
   0xa   :  { %s1721_s2 = smov 78   ;;  %s1723_s3 = smov 77  }
   0xb   :  { %1630 = vset.pattern.permute.xlu0 %v1691_v4  ;;  %s1725_s4 = smov 76   ;;  %s1727_s5 = smov 75  }
   0xc   :  { %87 = vperm.xlu0 %1630, %v1799_v1   ;;  %s1729_s6 = smov 74   ;;  %s1731_s7 = smov 56  }
   0xd   :  { %s1733_s8 = smov 55   ;;  %s1735_s9 = smov 54  }
   0xe   :  { %s1745_s10 = smov 53   ;;  %s1761_s11 = smov 52  }
   0xf   :  { %s1762_s12 = smov 51   ;;  %s1763_s13 = smov 50  }
  0x10   :  { %1631 = vset.pattern.permute.xlu0 %v1692_v5  ;;  %s1765_s15 = smov 31   ;;  %s1766_s16 = smov 30  }
  0x11   :  { %117 = vperm.xlu0 %1631, %v1799_v1  }
  0x15   :  { %1632 = vset.pattern.permute.xlu0 %v1693_v6 }
  0x16   :  { %147 = vperm.xlu0 %1632, %v1799_v1  }
  0x1a   :  { %1633 = vset.pattern.permute.xlu0 %v1694_v7 }
  0x1b   :  { %177 = vperm.xlu0 %1633, %v1799_v1  }
  0x1f   :  { %1634 = vset.pattern.permute.xlu0 %v1695_v8 }
  0x20   :  { %207 = vperm.xlu0 %1634, %v1799_v1  }
  0x24   :  { %1635 = vset.pattern.permute.xlu0 %v1696_v9 }
  0x25   :  { %237 = vperm.xlu0 %1635, %v1799_v1  }
  0x29   :  { %1636 = vset.pattern.permute.xlu0 %v1697_v10 }
  0x2a   :  { %267 = vperm.xlu0 %1636, %v1799_v1  }
  0x2e   :  { %1637 = vset.pattern.permute.xlu0 %v1698_v11 }
  0x2f   :  { %297 = vperm.xlu0 %1637, %v1799_v1  }
  0x33   :  { %1638 = vset.pattern.permute.xlu0 %v1699_v12 }
  0x34   :  { %327 = vperm.xlu0 %1638, %v1799_v1  }
  0x38   :  { %1639 = vset.pattern.permute.xlu0 %v1700_v13 }
  0x81   :  { %v1816_v15 = vpop.permute.xlu0 %20  ;;  %v58_v21 = vpop.permute.xlu1 %57 }
  0x82   :  { %v60_v25 = vmul.f32 %v58_v21, %v1823_v18  ;;  %v62_v30 = vmul.f32 %v58_v21, %v1837_v29  ;;  %v61_v34 = vmul.f32 %v58_v21, %v1830_v24  ;;  %v63_v37 = vmul.f32 %v58_v21, %v1821_v17 }
  0x86   :  { %v28_v20 = vpop.permute.xlu0 %27 }
  0x87   :  { %v33_v22 = vmul.f32 %v28_v20, %v1821_v17  ;;  %v30_v23 = vmul.f32 %v28_v20, %v1823_v18  ;;  %v31_v28 = vmul.f32 %v28_v20, %v1830_v24  ;;  %v32_v31 = vmul.f32 %v28_v20, %v1837_v29 }
  0x89   :  { %44 = vrot.lane.b32.xlu0 %v33_v22, %s1701_s14  ;;  %38 = vrot.lane.b32.xlu1 %v30_v23, %s1701_s14 }
  0x8b   :  { %v88_v27 = vpop.permute.xlu0 %87 }
  0x8c   :  { %v92_v33 = vmul.f32 %v88_v27, %v1837_v29  ;;  %v90_v40 = vmul.f32 %v88_v27, %v1823_v18  ;;  %v91_v43 = vmul.f32 %v88_v27, %v1830_v24  ;;  %v93_v45 = vmul.f32 %v88_v27, %v1821_v17 }
  0x8d   :  { %68 = vrot.lane.b32.xlu0 %v60_v25, %s1702_s17  ;;  %40 = vrot.lane.b32.xlu1 %v31_v28, %s1701_s14 }
  0x90   :  { %v118_v32 = vpop.permute.xlu0 %117 }
  0x91   :  { %72 = vrot.lane.b32.xlu0 %v62_v30, %s1702_s17  ;;  %42 = vrot.lane.b32.xlu1 %v32_v31, %s1701_s14  ;;  %v122_v36 = vmul.f32 %v118_v32, %v1837_v29  ;;  %v120_v48 = vmul.f32 %v118_v32, %v1823_v18  ;;  %v121_v51 = vmul.f32 %v118_v32, %v1830_v24  ;;  %s1764_s14 = smov 32  }
  0x92   :  { %v123_v54 = vmul.f32 %v118_v32, %v1821_v17 }
  0x95   :  { %v148_v35 = vpop.permute.xlu0 %147  ;;  %102 = vrot.lane.b32.xlu0 %v92_v33, %s1703_s18  ;;  %70 = vrot.lane.b32.xlu1 %v61_v34, %s1702_s17 }
  0x96   :  { %v152_v39 = vmul.f32 %v148_v35, %v1837_v29  ;;  %v150_v56 = vmul.f32 %v148_v35, %v1823_v18  ;;  %v151_v58 = vmul.f32 %v148_v35, %v1830_v24  ;;  %v153_v59 = vmul.f32 %v148_v35, %v1821_v17 }
  0x99   :  { %132 = vrot.lane.b32.xlu0 %v122_v36, %s1704_s19  ;;  %74 = vrot.lane.b32.xlu1 %v63_v37, %s1702_s17  ;;  %s1767_s17 = smov 29  }
  0x9a   :  { %v178_v38 = vpop.permute.xlu0 %177 }
  0x9b   :  { %v182_v42 = vmul.f32 %v178_v38, %v1837_v29  ;;  %v180_v61 = vmul.f32 %v178_v38, %v1823_v18  ;;  %v181_v62 = vmul.f32 %v178_v38, %v1830_v24  ;;  %v183_v63 = vmul.f32 %v178_v38, %v1821_v17 }
  0x9c   :  { %v1714_v38 = vmov 54  }
  0x9d   :  { %162 = vrot.lane.b32.xlu0 %v152_v39, %s1705_s20  ;;  %98 = vrot.lane.b32.xlu1 %v90_v40, %s1703_s18 }
  0x9f   :  { %v208_v41 = vpop.permute.xlu0 %207 }
  0xa0   :  { %v212_v44 = vmul.f32 %v208_v41, %v1837_v29  ;;  %v210_v0 = vmul.f32 %v208_v41, %v1823_v18  ;;  %v211_v2 = vmul.f32 %v208_v41, %v1830_v24  ;;  %v213_v3 = vmul.f32 %v208_v41, %v1821_v17 }
  0xa1   :  { %192 = vrot.lane.b32.xlu0 %v182_v42, %s1706_s21  ;;  %100 = vrot.lane.b32.xlu1 %v91_v43, %s1703_s18 }
  0xa4   :  { %v238_v46 = vpop.permute.xlu0 %237 }
  0xa5   :  { %222 = vrot.lane.b32.xlu0 %v212_v44, %s1707_s22  ;;  %104 = vrot.lane.b32.xlu1 %v93_v45, %s1703_s18  ;;  %v242_v47 = vmul.f32 %v238_v46, %v1837_v29  ;;  %v240_v4 = vmul.f32 %v238_v46, %v1823_v18  ;;  %v241_v5 = vmul.f32 %v238_v46, %v1830_v24  ;;  %v1716_v45 = vmov 55   ;;  %s1769_s18 = smov 28  }
  0xa6   :  { %v243_v6 = vmul.f32 %v238_v46, %v1821_v17 }
  0xa9   :  { %v268_v49 = vpop.permute.xlu0 %267  ;;  %252 = vrot.lane.b32.xlu0 %v242_v47, %s1708_s23  ;;  %128 = vrot.lane.b32.xlu1 %v120_v48, %s1704_s19 }
  0xaa   :  { %v272_v50 = vmul.f32 %v268_v49, %v1837_v29  ;;  %v270_v7 = vmul.f32 %v268_v49, %v1823_v18  ;;  %v271_v8 = vmul.f32 %v268_v49, %v1830_v24  ;;  %v273_v9 = vmul.f32 %v268_v49, %v1821_v17 }
  0xad   :  { %282 = vrot.lane.b32.xlu0 %v272_v50, %s1709_s24  ;;  %130 = vrot.lane.b32.xlu1 %v121_v51, %s1704_s19 }
  0xae   :  { %v298_v52 = vpop.permute.xlu0 %297 }
  0xaf   :  { %v302_v53 = vmul.f32 %v298_v52, %v1837_v29  ;;  %v300_v10 = vmul.f32 %v298_v52, %v1823_v18  ;;  %v301_v11 = vmul.f32 %v298_v52, %v1830_v24  ;;  %v303_v12 = vmul.f32 %v298_v52, %v1821_v17 }
  0xb0   :  { %v1718_v52 = vmov 56  }
  0xb1   :  { %312 = vrot.lane.b32.xlu0 %v302_v53, %s1710_s25  ;;  %134 = vrot.lane.b32.xlu1 %v123_v54, %s1704_s19  ;;  %s1770_s19 = smov 27  }
  0xb3   :  { %v328_v55 = vpop.permute.xlu0 %327 }
  0xb4   :  { %v332_v57 = vmul.f32 %v328_v55, %v1837_v29  ;;  %v330_v14 = vmul.f32 %v328_v55, %v1823_v18  ;;  %v331_v19 = vmul.f32 %v328_v55, %v1830_v24  ;;  %v333_v21 = vmul.f32 %v328_v55, %v1821_v17 }
  0xb5   :  { %158 = vrot.lane.b32.xlu1 %v150_v56, %s1705_s20 }
  0xb6   :  { %342 = vrot.lane.b32.xlu0 %v332_v57, %s1711_s26 }
  0xb9   :  { %160 = vrot.lane.b32.xlu1 %v151_v58, %s1705_s20 }
  0xba   :  { %357 = vperm.xlu0 %1639, %v1799_v1  }
  0xbd   :  { %164 = vrot.lane.b32.xlu1 %v153_v59, %s1705_s20  ;;  %v1720_v59 = vmov 57   ;;  %s1771_s20 = smov 26  }
  0xbe   :  { %1640 = vset.pattern.permute.xlu0 %v1712_v60 }
  0xc1   :  { %188 = vrot.lane.b32.xlu1 %v180_v61, %s1706_s21 }
  0xc5   :  { %190 = vrot.lane.b32.xlu1 %v181_v62, %s1706_s21 }
  0xc9   :  { %194 = vrot.lane.b32.xlu1 %v183_v63, %s1706_s21  ;;  %s1772_s21 = smov 8  }
  0xcd   :  { %218 = vrot.lane.b32.xlu1 %v210_v0, %s1707_s22 }
  0xd1   :  { %220 = vrot.lane.b32.xlu1 %v211_v2, %s1707_s22 }
  0xd5   :  { %224 = vrot.lane.b32.xlu1 %v213_v3, %s1707_s22  ;;  %v1722_v3 = vmov 58   ;;  %s1773_s22 = smov 7  }
  0xd9   :  { %248 = vrot.lane.b32.xlu1 %v240_v4, %s1708_s23 }
  0xdd   :  { %250 = vrot.lane.b32.xlu1 %v241_v5, %s1708_s23 }
  0xe1   :  { %254 = vrot.lane.b32.xlu1 %v243_v6, %s1708_s23  ;;  %s1774_s23 = smov 6  }
  0xe5   :  { %278 = vrot.lane.b32.xlu1 %v270_v7, %s1709_s24 }
  0xe9   :  { %280 = vrot.lane.b32.xlu1 %v271_v8, %s1709_s24 }
  0xed   :  { %284 = vrot.lane.b32.xlu1 %v273_v9, %s1709_s24  ;;  %s1775_s24 = smov 5  }
  0xf1   :  { %308 = vrot.lane.b32.xlu1 %v300_v10, %s1710_s25 }
  0xf5   :  { %310 = vrot.lane.b32.xlu1 %v301_v11, %s1710_s25  ;;  %v1724_v11 = vmov 59  }
  0xf9   :  { %314 = vrot.lane.b32.xlu1 %v303_v12, %s1710_s25  ;;  %s1776_s25 = smov 4  }
  0xfb   :  { %v1906_v13 = vpop.permute.xlu0 %44  ;;  %v1976_v10 = vpop.permute.xlu1 %38 }
  0xfd   :  { %338 = vrot.lane.b32.xlu1 %v330_v14, %s1711_s26 }
  0xff   :  { %v1910_v16 = vpop.permute.xlu0 %68  ;;  %v1980_v14 = vpop.permute.xlu1 %40 }
 0x101   :  { %340 = vrot.lane.b32.xlu1 %v331_v19, %s1711_s26 }
 0x103   :  { %v1914_v20 = vpop.permute.xlu0 %72 }
 0x105   :  { %344 = vrot.lane.b32.xlu1 %v333_v21, %s1711_s26  ;;  %s1777_s26 = smov 3  }
 0x107   :  { %v1918_v22 = vpop.permute.xlu0 %102 }
 0x10b   :  { %v1920_v23 = vpop.permute.xlu0 %132 }
 0x10f   :  { %v1922_v25 = vpop.permute.xlu0 %162 }
 0x113   :  { %v1924_v26 = vpop.permute.xlu0 %192 }
 0x117   :  { %v1926_v27 = vpop.permute.xlu0 %222 }
 0x11b   :  { %v1928_v28 = vpop.permute.xlu0 %252 }
 0x11f   :  { %v1930_v30 = vpop.permute.xlu0 %282 }
 0x123   :  { %v1932_v31 = vpop.permute.xlu0 %312 }
 0x128   :  { %v1934_v32 = vpop.permute.xlu0 %342 }
 0x139   :  { %v358_v33 = vpop.permute.xlu0 %357 }
 0x13a   :  { %v362_v34 = vmul.f32 %v358_v33, %v1837_v29  ;;  %v360_v35 = vmul.f32 %v358_v33, %v1823_v18  ;;  %v361_v36 = vmul.f32 %v358_v33, %v1830_v24  ;;  %v363_v37 = vmul.f32 %v358_v33, %v1821_v17 }
 0x13c   :  { %372 = vrot.lane.b32.xlu0 %v362_v34, %s1713_s27  ;;  %368 = vrot.lane.b32.xlu1 %v360_v35, %s1713_s27  ;;  %v1984_v34 = vpop.permute.xlu1 %42 }
 0x140   :  { %387 = vperm.xlu0 %1640, %v1799_v1   ;;  %370 = vrot.lane.b32.xlu1 %v361_v36, %s1713_s27 }
 0x144   :  { %374 = vrot.lane.b32.xlu1 %v363_v37, %s1713_s27  ;;  %1641 = vset.pattern.permute.xlu0 %v1714_v38  ;;  %v1989_v37 = vpop.permute.xlu1 %70  ;;  %v1726_v38 = vmov 60   ;;  %s1778_s27 = smov 2  }
 0x1ae   :  { %v1941_v39 = vpop.permute.xlu0 %372 }
 0x1af   :  { %2710 = vst [vmem:[#allocation2_spill] sm:$0xff] %v1941_v39 }
 0x1bf   :  { %v388_v40 = vpop.permute.xlu0 %387 }
 0x1c0   :  { %v392_v41 = vmul.f32 %v388_v40, %v1837_v29  ;;  %v390_v42 = vmul.f32 %v388_v40, %v1823_v18  ;;  %v391_v43 = vmul.f32 %v388_v40, %v1830_v24  ;;  %v393_v44 = vmul.f32 %v388_v40, %v1821_v17 }
 0x1c2   :  { %402 = vrot.lane.b32.xlu0 %v392_v41, %s1715_s28  ;;  %398 = vrot.lane.b32.xlu1 %v390_v42, %s1715_s28  ;;  %v1993_v41 = vpop.permute.xlu1 %74 }
 0x1c6   :  { %417 = vperm.xlu0 %1641, %v1799_v1   ;;  %400 = vrot.lane.b32.xlu1 %v391_v43, %s1715_s28 }
 0x1ca   :  { %404 = vrot.lane.b32.xlu1 %v393_v44, %s1715_s28  ;;  %1642 = vset.pattern.permute.xlu0 %v1716_v45  ;;  %v1999_v45 = vpop.permute.xlu1 %98 }
 0x234   :  { %v1948_v46 = vpop.permute.xlu0 %402 }
 0x235   :  { %2711 = vst [vmem:[#allocation3_spill] sm:$0xff] %v1948_v46 }
 0x245   :  { %v418_v47 = vpop.permute.xlu0 %417 }
 0x246   :  { %v422_v48 = vmul.f32 %v418_v47, %v1837_v29  ;;  %v420_v49 = vmul.f32 %v418_v47, %v1823_v18  ;;  %v421_v50 = vmul.f32 %v418_v47, %v1830_v24  ;;  %v423_v51 = vmul.f32 %v418_v47, %v1821_v17 }
 0x248   :  { %432 = vrot.lane.b32.xlu0 %v422_v48, %s1717_s29  ;;  %428 = vrot.lane.b32.xlu1 %v420_v49, %s1717_s29  ;;  %v2005_v49 = vpop.permute.xlu1 %100 }
 0x24c   :  { %447 = vperm.xlu0 %1642, %v1799_v1   ;;  %430 = vrot.lane.b32.xlu1 %v421_v50, %s1717_s29  ;;  %v1728_v50 = vmov 61  }
 0x250   :  { %434 = vrot.lane.b32.xlu1 %v423_v51, %s1717_s29  ;;  %1643 = vset.pattern.permute.xlu0 %v1718_v52  ;;  %v2010_v52 = vpop.permute.xlu1 %104 }
 0x2ba   :  { %v1955_v53 = vpop.permute.xlu0 %432 }
 0x2bb   :  { %2712 = vst [vmem:[#allocation4_spill] sm:$0xff] %v1955_v53 }
 0x2cb   :  { %v448_v54 = vpop.permute.xlu0 %447 }
 0x2cc   :  { %v452_v55 = vmul.f32 %v448_v54, %v1837_v29  ;;  %v450_v56 = vmul.f32 %v448_v54, %v1823_v18  ;;  %v451_v57 = vmul.f32 %v448_v54, %v1830_v24  ;;  %v453_v58 = vmul.f32 %v448_v54, %v1821_v17 }
 0x2ce   :  { %462 = vrot.lane.b32.xlu0 %v452_v55, %s1719_s30  ;;  %458 = vrot.lane.b32.xlu1 %v450_v56, %s1719_s30 }
 0x2d2   :  { %477 = vperm.xlu0 %1643, %v1799_v1   ;;  %460 = vrot.lane.b32.xlu1 %v451_v57, %s1719_s30  ;;  %v2014_v57 = vpop.permute.xlu1 %128 }
 0x2d6   :  { %464 = vrot.lane.b32.xlu1 %v453_v58, %s1719_s30  ;;  %1644 = vset.pattern.permute.xlu0 %v1720_v59  ;;  %s1779_s30 = smov 112  }
 0x340   :  { %v1962_v60 = vpop.permute.xlu0 %462 }
 0x341   :  { %2713 = vst [vmem:[#allocation5_spill] sm:$0xff] %v1962_v60 }
 0x351   :  { %v478_v61 = vpop.permute.xlu0 %477 }
 0x352   :  { %v482_v62 = vmul.f32 %v478_v61, %v1837_v29  ;;  %v480_v63 = vmul.f32 %v478_v61, %v1823_v18  ;;  %v481_v0 = vmul.f32 %v478_v61, %v1830_v24  ;;  %v483_v2 = vmul.f32 %v478_v61, %v1821_v17  ;;  %v2019_v61 = vpop.permute.xlu1 %130 }
 0x354   :  { %492 = vrot.lane.b32.xlu0 %v482_v62, %s1721_s2  ;;  %488 = vrot.lane.b32.xlu1 %v480_v63, %s1721_s2  ;;  %v1730_v62 = vmov 62  }
 0x358   :  { %507 = vperm.xlu0 %1644, %v1799_v1   ;;  %490 = vrot.lane.b32.xlu1 %v481_v0, %s1721_s2  ;;  %v2023_v0 = vpop.permute.xlu1 %134 }
 0x35c   :  { %494 = vrot.lane.b32.xlu1 %v483_v2, %s1721_s2  ;;  %1645 = vset.pattern.permute.xlu0 %v1722_v3  ;;  %s1780_s2 = smov 111  }
 0x3c6   :  { %v1969_v4 = vpop.permute.xlu0 %492 }
 0x3c7   :  { %2714 = vst [vmem:[#allocation6_spill] sm:$0xff] %v1969_v4 }
 0x3d7   :  { %v508_v5 = vpop.permute.xlu0 %507 }
 0x3d8   :  { %v512_v6 = vmul.f32 %v508_v5, %v1837_v29  ;;  %v510_v7 = vmul.f32 %v508_v5, %v1823_v18  ;;  %v511_v8 = vmul.f32 %v508_v5, %v1830_v24  ;;  %v513_v9 = vmul.f32 %v508_v5, %v1821_v17 }
 0x3da   :  { %522 = vrot.lane.b32.xlu0 %v512_v6, %s1723_s3  ;;  %518 = vrot.lane.b32.xlu1 %v510_v7, %s1723_s3  ;;  %v2027_v6 = vpop.permute.xlu1 %158 }
 0x3de   :  { %537 = vperm.xlu0 %1645, %v1799_v1   ;;  %520 = vrot.lane.b32.xlu1 %v511_v8, %s1723_s3 }
 0x3e2   :  { %524 = vrot.lane.b32.xlu1 %v513_v9, %s1723_s3  ;;  %1646 = vset.pattern.permute.xlu0 %v1724_v11  ;;  %v2032_v9 = vpop.permute.xlu1 %160  ;;  %v1732_v11 = vmov 63   ;;  %s1781_s3 = smov 110  }
 0x44c   :  { %v1978_v12 = vpop.permute.xlu0 %522 }
 0x44d   :  { %2715 = vst [vmem:[#allocation7_spill] sm:$0xff] %v1978_v12 }
 0x45d   :  { %v538_v19 = vpop.permute.xlu0 %537 }
 0x45e   :  { %v542_v21 = vmul.f32 %v538_v19, %v1837_v29  ;;  %v540_v33 = vmul.f32 %v538_v19, %v1823_v18  ;;  %v541_v35 = vmul.f32 %v538_v19, %v1830_v24  ;;  %v543_v36 = vmul.f32 %v538_v19, %v1821_v17 }
 0x460   :  { %552 = vrot.lane.b32.xlu0 %v542_v21, %s1725_s4  ;;  %548 = vrot.lane.b32.xlu1 %v540_v33, %s1725_s4  ;;  %v2036_v21 = vpop.permute.xlu1 %164 }
 0x464   :  { %567 = vperm.xlu0 %1646, %v1799_v1   ;;  %550 = vrot.lane.b32.xlu1 %v541_v35, %s1725_s4 }
 0x468   :  { %554 = vrot.lane.b32.xlu1 %v543_v36, %s1725_s4  ;;  %1647 = vset.pattern.permute.xlu0 %v1726_v38  ;;  %v2040_v38 = vpop.permute.xlu1 %188  ;;  %s1782_s4 = smov 109  }
 0x4d2   :  { %v1991_v40 = vpop.permute.xlu0 %552 }
 0x4d3   :  { %2716 = vst [vmem:[#allocation8_spill] sm:$0xff] %v1991_v40 }
 0x4e3   :  { %v568_v42 = vpop.permute.xlu0 %567 }
 0x4e4   :  { %v572_v43 = vmul.f32 %v568_v42, %v1837_v29  ;;  %v570_v44 = vmul.f32 %v568_v42, %v1823_v18  ;;  %v571_v47 = vmul.f32 %v568_v42, %v1830_v24  ;;  %v573_v48 = vmul.f32 %v568_v42, %v1821_v17 }
 0x4e6   :  { %582 = vrot.lane.b32.xlu0 %v572_v43, %s1727_s5  ;;  %578 = vrot.lane.b32.xlu1 %v570_v44, %s1727_s5  ;;  %v2045_v44 = vpop.permute.xlu1 %190 }
 0x4ea   :  { %597 = vperm.xlu0 %1647, %v1799_v1   ;;  %580 = vrot.lane.b32.xlu1 %v571_v47, %s1727_s5  ;;  %v1734_v47 = vmov 64  }
 0x4ee   :  { %584 = vrot.lane.b32.xlu1 %v573_v48, %s1727_s5  ;;  %1648 = vset.pattern.permute.xlu0 %v1728_v50  ;;  %v2047_v48 = vpop.permute.xlu1 %194 }
 0x4f2   :  { %v2049_v50 = vpop.permute.xlu1 %218 }
 0x558   :  { %v2008_v51 = vpop.permute.xlu0 %582 }
 0x559   :  { %2717 = vst [vmem:[#allocation9_spill] sm:$0xff] %v2008_v51 }
 0x569   :  { %v598_v54 = vpop.permute.xlu0 %597 }
 0x56a   :  { %v602_v55 = vmul.f32 %v598_v54, %v1837_v29  ;;  %v600_v56 = vmul.f32 %v598_v54, %v1823_v18  ;;  %v601_v58 = vmul.f32 %v598_v54, %v1830_v24  ;;  %v603_v59 = vmul.f32 %v598_v54, %v1821_v17  ;;  %v2051_v54 = vpop.permute.xlu1 %220 }
 0x56c   :  { %612 = vrot.lane.b32.xlu0 %v602_v55, %s1729_s6  ;;  %608 = vrot.lane.b32.xlu1 %v600_v56, %s1729_s6 }
 0x56e   :  { %v2053_v55 = vpop.permute.xlu1 %224 }
 0x570   :  { %627 = vperm.xlu0 %1648, %v1799_v1   ;;  %610 = vrot.lane.b32.xlu1 %v601_v58, %s1729_s6 }
 0x574   :  { %614 = vrot.lane.b32.xlu1 %v603_v59, %s1729_s6  ;;  %1649 = vset.pattern.permute.xlu0 %v1730_v62  ;;  %s1783_s6 = smov 108  }
 0x5de   :  { %v2021_v63 = vpop.permute.xlu0 %612 }
 0x5df   :  { %2718 = vst [vmem:[#allocation10_spill] sm:$0xff] %v2021_v63 }
 0x5ef   :  { %v628_v2 = vpop.permute.xlu0 %627 }
 0x5f0   :  { %v632_v3 = vmul.f32 %v628_v2, %v1837_v29  ;;  %v630_v5 = vmul.f32 %v628_v2, %v1823_v18  ;;  %v631_v7 = vmul.f32 %v628_v2, %v1830_v24  ;;  %v633_v8 = vmul.f32 %v628_v2, %v1821_v17  ;;  %v2059_v2 = vpop.permute.xlu1 %248 }
 0x5f2   :  { %642 = vrot.lane.b32.xlu0 %v632_v3, %s1731_s7  ;;  %638 = vrot.lane.b32.xlu1 %v630_v5, %s1731_s7 }
 0x5f4   :  { %v2063_v5 = vpop.permute.xlu1 %250 }
 0x5f6   :  { %657 = vperm.xlu0 %1649, %v1799_v1   ;;  %640 = vrot.lane.b32.xlu1 %v631_v7, %s1731_s7 }
 0x5fa   :  { %644 = vrot.lane.b32.xlu1 %v633_v8, %s1731_s7  ;;  %1650 = vset.pattern.permute.xlu0 %v1732_v11  ;;  %v1736_v8 = vmov 65   ;;  %v1737_v11 = vmov 66   ;;  %s1784_s7 = smov 107  }
 0x5fb   :  { %1652 = vset.pattern.permute.xlu1 %v1736_v8 }
 0x664   :  { %v2034_v19 = vpop.permute.xlu0 %642 }
 0x665   :  { %2719 = vst [vmem:[#allocation11_spill] sm:$0xff] %v2034_v19 }
 0x675   :  { %v658_v33 = vpop.permute.xlu0 %657 }
 0x676   :  { %v662_v35 = vmul.f32 %v658_v33, %v1837_v29  ;;  %v660_v36 = vmul.f32 %v658_v33, %v1823_v18  ;;  %v661_v42 = vmul.f32 %v658_v33, %v1830_v24  ;;  %v663_v43 = vmul.f32 %v658_v33, %v1821_v17  ;;  %v2067_v33 = vpop.permute.xlu1 %254 }
 0x678   :  { %672 = vrot.lane.b32.xlu0 %v662_v35, %s1733_s8  ;;  %668 = vrot.lane.b32.xlu1 %v660_v36, %s1733_s8  ;;  %v1738_v35 = vmov 69  }
 0x67a   :  { %v2070_v36 = vpop.permute.xlu1 %278 }
 0x67c   :  { %687 = vperm.xlu0 %1650, %v1799_v1   ;;  %670 = vrot.lane.b32.xlu1 %v661_v42, %s1733_s8  ;;  %v1739_v42 = vmov 72  }
 0x680   :  { %674 = vrot.lane.b32.xlu1 %v663_v43, %s1733_s8  ;;  %1651 = vset.pattern.permute.xlu0 %v1734_v47  ;;  %v2073_v43 = vpop.permute.xlu1 %280  ;;  %v1740_v47 = vmov 75   ;;  %s1785_s8 = smov 106  }
 0x6ea   :  { %v2055_v56 = vpop.permute.xlu0 %672 }
 0x6eb   :  { %2720 = vst [vmem:[#allocation12_spill] sm:$0xff] %v2055_v56 }
 0x6fb   :  { %v688_v58 = vpop.permute.xlu0 %687 }
 0x6fc   :  { %v692_v59 = vmul.f32 %v688_v58, %v1837_v29  ;;  %v690_v62 = vmul.f32 %v688_v58, %v1823_v18  ;;  %v691_v3 = vmul.f32 %v688_v58, %v1830_v24  ;;  %v693_v7 = vmul.f32 %v688_v58, %v1821_v17 }
 0x6fd   :  { %v1741_v58 = vmov 78  }
 0x6fe   :  { %702 = vrot.lane.b32.xlu0 %v692_v59, %s1735_s9  ;;  %698 = vrot.lane.b32.xlu1 %v690_v62, %s1735_s9  ;;  %v2076_v59 = vpop.permute.xlu1 %284  ;;  %v1742_v62 = vmov 81  }
 0x702   :  { %717 = vperm.xlu0 %1651, %v1799_v1   ;;  %700 = vrot.lane.b32.xlu1 %v691_v3, %s1735_s9  ;;  %v2080_v3 = vpop.permute.xlu1 %308 }
 0x706   :  { %704 = vrot.lane.b32.xlu1 %v693_v7, %s1735_s9  ;;  %1653 = vset.pattern.permute.xlu0 %v1737_v11  ;;  %v1743_v7 = vmov 84   ;;  %v2083_v8 = vpop.permute.xlu1 %310  ;;  %v1744_v11 = vmov 87  }
 0x707   :  { %777 = vperm.xlu0 %1653, %v1799_v1  }
 0x70b   :  { %1656 = vset.pattern.permute.xlu0 %v1738_v35  ;;  %v2086_v35 = vpop.permute.xlu1 %314 }
 0x70c   :  { %867 = vperm.xlu0 %1656, %v1799_v1  }
 0x710   :  { %1659 = vset.pattern.permute.xlu0 %v1739_v42  ;;  %v2088_v42 = vpop.permute.xlu1 %338 }
 0x711   :  { %957 = vperm.xlu0 %1659, %v1799_v1  }
 0x715   :  { %1662 = vset.pattern.permute.xlu0 %v1740_v47  ;;  %v2090_v47 = vpop.permute.xlu1 %340 }
 0x716   :  { %1047 = vperm.xlu0 %1662, %v1799_v1  }
 0x71a   :  { %1665 = vset.pattern.permute.xlu0 %v1741_v58  ;;  %v2092_v58 = vpop.permute.xlu1 %344 }
 0x71b   :  { %1137 = vperm.xlu0 %1665, %v1799_v1  }
 0x71f   :  { %1668 = vset.pattern.permute.xlu0 %v1742_v62  ;;  %v2094_v62 = vpop.permute.xlu1 %368 }
 0x720   :  { %1227 = vperm.xlu0 %1668, %v1799_v1   ;;  %2721 = vst [vmem:[#allocation13_spill] sm:$0xff] %v2094_v62 }
 0x723   :  { %v2096_v56 = vpop.permute.xlu1 %370 }
 0x724   :  { %1671 = vset.pattern.permute.xlu0 %v1743_v7 }
 0x725   :  { %1317 = vperm.xlu0 %1671, %v1799_v1  }
 0x727   :  { %v2098_v7 = vpop.permute.xlu1 %374 }
 0x728   :  { %2722 = vst [vmem:[#allocation14_spill] sm:$0xff] %v2098_v7 }
 0x729   :  { %1674 = vset.pattern.permute.xlu0 %v1744_v11 }
 0x72a   :  { %1407 = vperm.xlu0 %1674, %v1799_v1  }
 0x72b   :  { %v2100_v19 = vpop.permute.xlu1 %398 }
 0x72c   :  { %2723 = vst [vmem:[#allocation15_spill] sm:$0xff] %v2100_v19 }
 0x72f   :  { %v2102_v63 = vpop.permute.xlu1 %400 }
 0x730   :  { %2724 = vst [vmem:[#allocation16_spill] sm:$0xff] %v2102_v63 }
 0x733   :  { %v2104_v11 = vpop.permute.xlu1 %404 }
 0x734   :  { %2725 = vst [vmem:[#allocation17_spill] sm:$0xff] %v2104_v11 }
 0x737   :  { %v2106_v51 = vpop.permute.xlu1 %428 }
 0x738   :  { %2726 = vst [vmem:[#allocation18_spill] sm:$0xff] %v2106_v51 }
 0x73b   :  { %v2108_v40 = vpop.permute.xlu1 %430 }
 0x73c   :  { %2727 = vst [vmem:[#allocation19_spill] sm:$0xff] %v2108_v40 }
 0x73f   :  { %v2110_v12 = vpop.permute.xlu1 %434 }
 0x740   :  { %2728 = vst [vmem:[#allocation20_spill] sm:$0xff] %v2110_v12  ;;  %v1748_v12 = vmov 70  }
 0x743   :  { %v2112_v4 = vpop.permute.xlu1 %458 }
 0x744   :  { %2729 = vst [vmem:[#allocation21_spill] sm:$0xff] %v2112_v4 }
 0x747   :  { %v2114_v60 = vpop.permute.xlu1 %460 }
 0x748   :  { %2730 = vst [vmem:[#allocation22_spill] sm:$0xff] %v2114_v60  ;;  %v1747_v60 = vmov 68  }
 0x74b   :  { %v2118_v46 = vpop.permute.xlu1 %464 }
 0x74c   :  { %2732 = vst [vmem:[#allocation24_spill] sm:$0xff] %v2118_v46  ;;  %v1746_v46 = vmov 67  }
 0x74f   :  { %v2126_v11 = vpop.permute.xlu1 %488 }
 0x750   :  { %2733 = vst [vmem:[#allocation25_spill] sm:$0xff] %v2126_v11 }
 0x770   :  { %v2116_v53 = vpop.permute.xlu0 %702 }
 0x771   :  { %2731 = vst [vmem:[#allocation23_spill] sm:$0xff] %v2116_v53  ;;  %v2131_v53 = vpop.permute.xlu1 %490 }
 0x772   :  { %2734 = vst [vmem:[#allocation26_spill] sm:$0xff] %v2131_v53  ;;  %v1750_v53 = vmov 73  }
 0x775   :  { %v2134_v4 = vpop.permute.xlu1 %494 }
 0x776   :  { %2735 = vst [vmem:[#allocation27_spill] sm:$0xff] %v2134_v4  ;;  %v1751_v4 = vmov 74  }
 0x779   :  { %v2137_v11 = vpop.permute.xlu1 %518 }
 0x77a   :  { %2736 = vst [vmem:[#allocation28_spill] sm:$0xff] %v2137_v11  ;;  %v1752_v11 = vmov 76  }
 0x781   :  { %v2120_v7 = vpop.permute.xlu0 %717 }
 0x782   :  { %v722_v19 = vmul.f32 %v2120_v7, %v1837_v29  ;;  %v720_v51 = vmul.f32 %v2120_v7, %v1823_v18 }
 0x784   :  { %732 = vrot.lane.b32.xlu0 %v722_v19, %s1745_s10  ;;  %728 = vrot.lane.b32.xlu1 %v720_v51, %s1745_s10  ;;  %v2140_v51 = vpop.permute.xlu1 %520  ;;  %v1749_v19 = vmov 71  }
 0x785   :  { %2737 = vst [vmem:[#allocation29_spill] sm:$0xff] %v2140_v51  ;;  %v1753_v51 = vmov 77  }
 0x788   :  { %747 = vperm.xlu1 %1652, %v1799_v1  }
 0x78c   :  { %1654 = vset.pattern.permute.xlu1 %v1746_v46  ;;  %v2143_v46 = vpop.permute.xlu1 %524 }
 0x78d   :  { %807 = vperm.xlu1 %1654, %v1799_v1   ;;  %2738 = vst [vmem:[#allocation30_spill] sm:$0xff] %v2143_v46  ;;  %v1754_v46 = vmov 79  }
 0x791   :  { %1655 = vset.pattern.permute.xlu1 %v1747_v60  ;;  %v2146_v60 = vpop.permute.xlu1 %548 }
 0x792   :  { %837 = vperm.xlu1 %1655, %v1799_v1   ;;  %2739 = vst [vmem:[#allocation31_spill] sm:$0xff] %v2146_v60  ;;  %v1755_v60 = vmov 80  }
 0x796   :  { %1657 = vset.pattern.permute.xlu1 %v1748_v12  ;;  %v2149_v12 = vpop.permute.xlu1 %550 }
 0x797   :  { %897 = vperm.xlu1 %1657, %v1799_v1   ;;  %2740 = vst [vmem:[#allocation32_spill] sm:$0xff] %v2149_v12 }
 0x79b   :  { %1658 = vset.pattern.permute.xlu1 %v1749_v19  ;;  %v2152_v19 = vpop.permute.xlu1 %554 }
 0x79c   :  { %927 = vperm.xlu1 %1658, %v1799_v1   ;;  %2741 = vst [vmem:[#allocation33_spill] sm:$0xff] %v2152_v19  ;;  %v1757_v19 = vmov 83  }
 0x7a0   :  { %1660 = vset.pattern.permute.xlu1 %v1750_v53  ;;  %v2155_v53 = vpop.permute.xlu1 %578 }
 0x7a1   :  { %987 = vperm.xlu1 %1660, %v1799_v1   ;;  %2742 = vst [vmem:[#allocation34_spill] sm:$0xff] %v2155_v53 }
 0x7a5   :  { %1661 = vset.pattern.permute.xlu1 %v1751_v4  ;;  %v2158_v4 = vpop.permute.xlu1 %580 }
 0x7a6   :  { %1017 = vperm.xlu1 %1661, %v1799_v1   ;;  %2743 = vst [vmem:[#allocation35_spill] sm:$0xff] %v2158_v4 }
 0x7a9   :  { %v2161_v12 = vpop.permute.xlu1 %584 }
 0x7aa   :  { %1663 = vset.pattern.permute.xlu1 %v1752_v11  ;;  %v1756_v11 = vmov 82   ;;  %2744 = vst [vmem:[#allocation36_spill] sm:$0xff] %v2161_v12  ;;  %v1760_v12 = vmov 88  }
 0x7ab   :  { %1077 = vperm.xlu1 %1663, %v1799_v1  }
 0x7af   :  { %1664 = vset.pattern.permute.xlu1 %v1753_v51  ;;  %v2164_v51 = vpop.permute.xlu1 %608 }
 0x7b0   :  { %1107 = vperm.xlu1 %1664, %v1799_v1   ;;  %2745 = vst [vmem:[#allocation37_spill] sm:$0xff] %v2164_v51 }
 0x7b3   :  { %v2167_v53 = vpop.permute.xlu1 %610 }
 0x7b4   :  { %1666 = vset.pattern.permute.xlu1 %v1754_v46  ;;  %v1758_v46 = vmov 85   ;;  %2746 = vst [vmem:[#allocation38_spill] sm:$0xff] %v2167_v53 }
 0x7b5   :  { %1167 = vperm.xlu1 %1666, %v1799_v1  }
 0x7b9   :  { %1667 = vset.pattern.permute.xlu1 %v1755_v60  ;;  %v1759_v60 = vmov 86  }
 0x7ba   :  { %1197 = vperm.xlu1 %1667, %v1799_v1  }
 0x7be   :  { %1669 = vset.pattern.permute.xlu1 %v1756_v11  ;;  %v2171_v11 = vpop.permute.xlu1 %614 }
 0x7bf   :  { %1257 = vperm.xlu1 %1669, %v1799_v1   ;;  %2747 = vst [vmem:[#allocation39_spill] sm:$0xff] %v2171_v11 }
 0x7c2   :  { %v2173_v4 = vpop.permute.xlu1 %638 }
 0x7c3   :  { %1670 = vset.pattern.permute.xlu1 %v1757_v19  ;;  %2748 = vst [vmem:[#allocation40_spill] sm:$0xff] %v2173_v4  ;;  %v721_v19 = vmul.f32 %v2120_v7, %v1830_v24 }
 0x7c4   :  { %1287 = vperm.xlu1 %1670, %v1799_v1  }
 0x7c8   :  { %1672 = vset.pattern.permute.xlu1 %v1758_v46  ;;  %v2179_v46 = vpop.permute.xlu1 %640 }
 0x7c9   :  { %1347 = vperm.xlu1 %1672, %v1799_v1   ;;  %2749 = vst [vmem:[#allocation41_spill] sm:$0xff] %v2179_v46 }
 0x7cc   :  { %v2184_v51 = vpop.permute.xlu1 %644 }
 0x7cd   :  { %1673 = vset.pattern.permute.xlu1 %v1759_v60  ;;  %v723_v60 = vmul.f32 %v2120_v7, %v1821_v17  ;;  %2750 = vst [vmem:[#allocation42_spill] sm:$0xff] %v2184_v51 }
 0x7ce   :  { %1377 = vperm.xlu1 %1673, %v1799_v1  }
 0x7d0   :  { %v2186_v11 = vpop.permute.xlu1 %668 }
 0x7d1   :  { %2751 = vst [vmem:[#allocation43_spill] sm:$0xff] %v2186_v11 }
 0x7d2   :  { %1675 = vset.pattern.permute.xlu1 %v1760_v12 }
 0x7d3   :  { %1437 = vperm.xlu1 %1675, %v1799_v1  }
 0x7d4   :  { %v2188_v12 = vpop.permute.xlu1 %670 }
 0x7d5   :  { %2752 = vst [vmem:[#allocation44_spill] sm:$0xff] %v2188_v12  ;;  %v778_v12 = vpop.permute.xlu0 %777 }
 0x7d7   :  { %730 = vrot.lane.b32.xlu1 %v721_v19, %s1745_s10 }
 0x7d8   :  { %v2190_v4 = vpop.permute.xlu1 %674 }
 0x7d9   :  { %2753 = vst [vmem:[#allocation45_spill] sm:$0xff] %v2190_v4 }
 0x7db   :  { %734 = vrot.lane.b32.xlu1 %v723_v60, %s1745_s10 }
 0x7dc   :  { %v2192_v1 = vpop.permute.xlu1 %698 }
 0x7dd   :  { %2754 = vst [vmem:[#allocation46_spill] sm:$0xff] %v2192_v1  ;;  %v781_v1 = vmul.f32 %v778_v12, %v1830_v24 }
 0x7e0   :  { %v2194_v53 = vpop.permute.xlu1 %700 }
 0x7e1   :  { %2755 = vst [vmem:[#allocation47_spill] sm:$0xff] %v2194_v53  ;;  %v783_v53 = vmul.f32 %v778_v12, %v1821_v17 }
 0x7e4   :  { %v2196_v19 = vpop.permute.xlu1 %704 }
 0x7e5   :  { %2756 = vst [vmem:[#allocation48_spill] sm:$0xff] %v2196_v19  ;;  %v780_v19 = vmul.f32 %v778_v12, %v1823_v18 }
 0x7f6   :  { %v2198_v46 = vpop.permute.xlu1 %728 }
 0x7f7   :  { %2757 = vst [vmem:[#allocation49_spill] sm:$0xff] %v2198_v46 }
 0x807   :  { %v748_v40 = vpop.permute.xlu1 %747 }
 0x808   :  { %v751_v7 = vmul.f32 %v748_v40, %v1830_v24  ;;  %v750_v60 = vmul.f32 %v748_v40, %v1823_v18  ;;  %v753_v11 = vmul.f32 %v748_v40, %v1821_v17  ;;  %v752_v4 = vmul.f32 %v748_v40, %v1837_v29 }
 0x80a   :  { %760 = vrot.lane.b32.xlu1 %v751_v7, %s1761_s11  ;;  %758 = vrot.lane.b32.xlu0 %v750_v60, %s1761_s11  ;;  %v782_v7 = vmul.f32 %v778_v12, %v1837_v29 }
 0x80c   :  { %v808_v46 = vpop.permute.xlu1 %807 }
 0x80d   :  { %v811_v60 = vmul.f32 %v808_v46, %v1830_v24  ;;  %v810_v40 = vmul.f32 %v808_v46, %v1823_v18 }
 0x80e   :  { %764 = vrot.lane.b32.xlu1 %v753_v11, %s1761_s11  ;;  %762 = vrot.lane.b32.xlu0 %v752_v4, %s1761_s11  ;;  %v813_v11 = vmul.f32 %v808_v46, %v1821_v17 }
 0x811   :  { %v838_v4 = vpop.permute.xlu1 %837 }
 0x812   :  { %790 = vrot.lane.b32.xlu1 %v781_v1, %s1762_s12  ;;  %788 = vrot.lane.b32.xlu0 %v780_v19, %s1762_s12  ;;  %v812_v1 = vmul.f32 %v808_v46, %v1837_v29  ;;  %v841_v19 = vmul.f32 %v838_v4, %v1830_v24  ;;  %v840_v12 = vmul.f32 %v838_v4, %v1823_v18 }
 0x816   :  { %794 = vrot.lane.b32.xlu1 %v783_v53, %s1762_s12  ;;  %792 = vrot.lane.b32.xlu0 %v782_v7, %s1762_s12  ;;  %v898_v53 = vpop.permute.xlu1 %897  ;;  %v843_v7 = vmul.f32 %v838_v4, %v1821_v17 }
 0x817   :  { %v902_v63 = vmul.f32 %v898_v53, %v1837_v29 }
 0x81a   :  { %820 = vrot.lane.b32.xlu1 %v811_v60, %s1763_s13  ;;  %818 = vrot.lane.b32.xlu0 %v810_v40, %s1763_s13  ;;  %v842_v60 = vmul.f32 %v838_v4, %v1837_v29  ;;  %v868_v40 = vpop.permute.xlu0 %867  ;;  %v900_v4 = vmul.f32 %v898_v53, %v1823_v18 }
 0x81b   :  { %v871_v51 = vmul.f32 %v868_v40, %v1830_v24  ;;  %v870_v46 = vmul.f32 %v868_v40, %v1823_v18 }
 0x81e   :  { %824 = vrot.lane.b32.xlu1 %v813_v11, %s1763_s13  ;;  %822 = vrot.lane.b32.xlu0 %v812_v1, %s1763_s13  ;;  %v928_v11 = vpop.permute.xlu1 %927  ;;  %v873_v1 = vmul.f32 %v868_v40, %v1821_v17  ;;  %v958_v39 = vpop.permute.xlu0 %957 }
 0x822   :  { %850 = vrot.lane.b32.xlu1 %v841_v19, %s1764_s14  ;;  %848 = vrot.lane.b32.xlu0 %v840_v12, %s1764_s14  ;;  %v872_v19 = vmul.f32 %v868_v40, %v1837_v29  ;;  %v901_v12 = vmul.f32 %v898_v53, %v1830_v24  ;;  %v930_v40 = vmul.f32 %v928_v11, %v1823_v18 }
 0x826   :  { %854 = vrot.lane.b32.xlu1 %v843_v7, %s1764_s14  ;;  %852 = vrot.lane.b32.xlu0 %v842_v60, %s1764_s14  ;;  %v988_v7 = vpop.permute.xlu1 %987  ;;  %v903_v60 = vmul.f32 %v898_v53, %v1821_v17  ;;  %v960_v53 = vmul.f32 %v958_v39, %v1823_v18 }
 0x82a   :  { %880 = vrot.lane.b32.xlu1 %v871_v51, %s1765_s15  ;;  %878 = vrot.lane.b32.xlu0 %v870_v46, %s1765_s15  ;;  %v1018_v51 = vpop.permute.xlu1 %1017  ;;  %v931_v46 = vmul.f32 %v928_v11, %v1830_v24 }
 0x82e   :  { %884 = vrot.lane.b32.xlu1 %v873_v1, %s1765_s15  ;;  %882 = vrot.lane.b32.xlu0 %v872_v19, %s1765_s15  ;;  %v1768_v1 = vmov 89   ;;  %v2226_v19 = vpop.permute.xlu1 %1077 }
 0x82f   :  { %1676 = vset.pattern.permute.xlu0 %v1768_v1  ;;  %v990_v1 = vmul.f32 %v988_v7, %v1823_v18 }
 0x832   :  { %910 = vrot.lane.b32.xlu1 %v901_v12, %s1766_s16  ;;  %908 = vrot.lane.b32.xlu0 %v900_v4, %s1766_s16  ;;  %v933_v12 = vmul.f32 %v928_v11, %v1821_v17  ;;  %v932_v4 = vmul.f32 %v928_v11, %v1837_v29  ;;  %v991_v11 = vmul.f32 %v988_v7, %v1830_v24 }
 0x836   :  { %914 = vrot.lane.b32.xlu1 %v903_v60, %s1766_s16  ;;  %912 = vrot.lane.b32.xlu0 %v902_v63, %s1766_s16  ;;  %v961_v63 = vmul.f32 %v958_v39, %v1830_v24  ;;  %v2232_v60 = vpop.permute.xlu1 %1107 }
 0x83a   :  { %940 = vrot.lane.b32.xlu1 %v931_v46, %s1767_s17  ;;  %938 = vrot.lane.b32.xlu0 %v930_v40, %s1767_s17  ;;  %v963_v46 = vmul.f32 %v958_v39, %v1821_v17  ;;  %v962_v40 = vmul.f32 %v958_v39, %v1837_v29  ;;  %v1021_v39 = vmul.f32 %v1018_v51, %v1830_v24 }
 0x83e   :  { %944 = vrot.lane.b32.xlu1 %v933_v12, %s1767_s17  ;;  %942 = vrot.lane.b32.xlu0 %v932_v4, %s1767_s17  ;;  %v2238_v12 = vpop.permute.xlu1 %1167  ;;  %v993_v4 = vmul.f32 %v988_v7, %v1821_v17 }
 0x83f   :  { %2758 = vst [vmem:[#allocation50_spill] sm:$0xff] %v2238_v12 }
 0x842   :  { %970 = vrot.lane.b32.xlu1 %v961_v63, %s1769_s18  ;;  %968 = vrot.lane.b32.xlu0 %v960_v53, %s1769_s18  ;;  %v992_v63 = vmul.f32 %v988_v7, %v1837_v29  ;;  %v2242_v53 = vpop.permute.xlu1 %1197  ;;  %v1023_v7 = vmul.f32 %v1018_v51, %v1821_v17 }
 0x843   :  { %2759 = vst [vmem:[#allocation51_spill] sm:$0xff] %v2242_v53  ;;  %v24_v53 = vmul.f32 %v1816_v15, %v1830_v24 }
 0x846   :  { %974 = vrot.lane.b32.xlu1 %v963_v46, %s1769_s18  ;;  %972 = vrot.lane.b32.xlu0 %v962_v40, %s1769_s18  ;;  %v1020_v46 = vmul.f32 %v1018_v51, %v1823_v18  ;;  %v47_v40 = vsel %vm46_vm0, %v1976_v10, %v1980_v14  ;;  %v77_v10 = vsel %vm76_vm1, %v1910_v16, %v1989_v37 }
 0x847   :  { %v79_v16 = vsel %vm76_vm1, %v1914_v20, %v1993_v41 }
 0x84a   :  { %1000 = vrot.lane.b32.xlu1 %v991_v11, %s1770_s19  ;;  %998 = vrot.lane.b32.xlu0 %v990_v1, %s1770_s19  ;;  %v2248_v11 = vpop.permute.xlu1 %1257  ;;  %v1022_v1 = vmul.f32 %v1018_v51, %v1837_v29 }
 0x84b   :  { %2760 = vst [vmem:[#allocation52_spill] sm:$0xff] %v2248_v11 }
 0x84e   :  { %1004 = vrot.lane.b32.xlu1 %v993_v4, %s1770_s19  ;;  %1002 = vrot.lane.b32.xlu0 %v992_v63, %s1770_s19  ;;  %v23_v4 = vmul.f32 %v1816_v15, %v1823_v18  ;;  %v48_v63 = vsel %vm46_vm0, %v1980_v14, %v1984_v34  ;;  %v25_v14 = vmul.f32 %v1816_v15, %v1837_v29  ;;  %v2285_v41 = vpop.permute.xlu1 %1287 }
 0x84f   :  { %v108_v15 = vsel %vm106_vm2, %v2005_v49, %v1918_v22 }
 0x850   :  { %v53_v12 = vadd.f32 %v47_v40, %v23_v4 }
 0x852   :  { %1030 = vrot.lane.b32.xlu1 %v1021_v39, %s1771_s20  ;;  %1028 = vrot.lane.b32.xlu0 %v1020_v46, %s1771_s20  ;;  %v49_v39 = vsel %vm46_vm0, %v1984_v34, %v1906_v13  ;;  %v1048_v46 = vpop.permute.xlu0 %1047  ;;  %v78_v13 = vsel %vm76_vm1, %v1989_v37, %v1914_v20  ;;  %v107_v34 = vsel %vm106_vm2, %v1999_v45, %v2005_v49  ;;  %vm526_vm0 = vcmask 629760  }
 0x853   :  { %v1051_v11 = vmul.f32 %v1048_v46, %v1830_v24  ;;  %v1050_v51 = vmul.f32 %v1048_v46, %v1823_v18  ;;  %v83_v62 = vadd.f32 %v77_v10, %v53_v12  ;;  %v109_v37 = vsel %vm106_vm2, %v1918_v22, %v2010_v52 }
 0x854   :  { %v137_v20 = vsel %vm136_vm3, %v2014_v57, %v2019_v61  ;;  %v138_v49 = vsel %vm136_vm3, %v2019_v61, %v1920_v23  ;;  %v139_v22 = vsel %vm136_vm3, %v1920_v23, %v2023_v0  ;;  %v167_v52 = vsel %vm166_vm4, %v2027_v6, %v2032_v9 }
 0x855   :  { %v1053_v57 = vmul.f32 %v1048_v46, %v1821_v17  ;;  %v1052_v40 = vmul.f32 %v1048_v46, %v1837_v29  ;;  %v168_v61 = vsel %vm166_vm4, %v2032_v9, %v1922_v25  ;;  %v169_v23 = vsel %vm166_vm4, %v1922_v25, %v2036_v21 }
 0x856   :  { %1034 = vrot.lane.b32.xlu1 %v1023_v7, %s1771_s20  ;;  %1032 = vrot.lane.b32.xlu0 %v1022_v1, %s1771_s20  ;;  %v54_v7 = vadd.f32 %v48_v63, %v24_v53  ;;  %v55_v1 = vadd.f32 %v49_v39, %v25_v14  ;;  %v113_v53 = vadd.f32 %v107_v34, %v83_v62  ;;  %v2316_v21 = vpop.permute.xlu0 %1137  ;;  %vm556_vm1 = vcmask 621568  }
 0x857   :  { %v197_v0 = vsel %vm196_vm5, %v2040_v38, %v2045_v44  ;;  %v198_v46 = vsel %vm196_vm5, %v2045_v44, %v1924_v26  ;;  %v199_v9 = vsel %vm196_vm5, %v1924_v26, %v2047_v48  ;;  %v227_v25 = vsel %vm226_vm6, %v2049_v50, %v2051_v54  ;;  %v2318_v38 = vpop.permute.xlu1 %1347 }
 0x858   :  { %v84_v45 = vadd.f32 %v78_v13, %v54_v7  ;;  %v85_v12 = vadd.f32 %v79_v16, %v55_v1  ;;  %v143_v63 = vadd.f32 %v137_v20, %v113_v53  ;;  %v1081_v10 = vmul.f32 %v2226_v19, %v1830_v24 }
 0x859   :  { %v228_v26 = vsel %vm226_vm6, %v2051_v54, %v1926_v27  ;;  %v229_v48 = vsel %vm226_vm6, %v1926_v27, %v2053_v55  ;;  %v257_v50 = vsel %vm256_vm7, %v2059_v2, %v2063_v5  ;;  %v258_v1 = vsel %vm256_vm7, %v2063_v5, %v1928_v28 }
 0x85a   :  { %1060 = vrot.lane.b32.xlu1 %v1051_v11, %s1772_s21  ;;  %1058 = vrot.lane.b32.xlu0 %v1050_v51, %s1772_s21  ;;  %v114_v11 = vadd.f32 %v108_v15, %v84_v45  ;;  %v115_v4 = vadd.f32 %v109_v37, %v85_v12  ;;  %v173_v39 = vadd.f32 %v167_v52, %v143_v63  ;;  %v2762_v63 = vld [vmem:[#allocation2_spill] sm:$0xff]  ;;  %vm586_vm2 = vcmask 613376  }
 0x85b   :  { %v1080_v51 = vmul.f32 %v2226_v19, %v1823_v18  ;;  %v259_v54 = vsel %vm256_vm7, %v1928_v28, %v2067_v33  ;;  %v287_v27 = vsel %vm286_vm8, %v2070_v36, %v2073_v43  ;;  %v1083_v55 = vmul.f32 %v2226_v19, %v1821_v17  ;;  %v2355_v36 = vpop.permute.xlu0 %1227  ;;  %v2357_v45 = vpop.permute.xlu1 %1377 }
 0x85c   :  { %v144_v6 = vadd.f32 %v138_v49, %v114_v11  ;;  %v145_v62 = vadd.f32 %v139_v22, %v115_v4  ;;  %v203_v13 = vadd.f32 %v197_v0, %v173_v39  ;;  %v1082_v2 = vmul.f32 %v2226_v19, %v1837_v29  ;;  %v2761_v11 = vld [vmem:[#allocation13_spill] sm:$0xff]  ;;  %v2764_v39 = vld [vmem:[#allocation16_spill] sm:$0xff] }
 0x85d   :  { %v288_v5 = vsel %vm286_vm8, %v2073_v43, %v1930_v30  ;;  %v289_v28 = vsel %vm286_vm8, %v1930_v30, %v2076_v59  ;;  %v317_v33 = vsel %vm316_vm9, %v2080_v3, %v2083_v8  ;;  %v318_v43 = vsel %vm316_vm9, %v2083_v8, %v1932_v31 }
 0x85e   :  { %1064 = vrot.lane.b32.xlu1 %v1053_v57, %s1772_s21  ;;  %1062 = vrot.lane.b32.xlu0 %v1052_v40, %s1772_s21  ;;  %v174_v14 = vadd.f32 %v168_v61, %v144_v6  ;;  %v175_v44 = vadd.f32 %v169_v23, %v145_v62  ;;  %v233_v7 = vadd.f32 %v227_v25, %v203_v13  ;;  %v2767_v13 = vld [vmem:[#allocation17_spill] sm:$0xff]  ;;  %vm616_vm3 = vcmask 605184  }
 0x85f   :  { %v319_v30 = vsel %vm316_vm9, %v1932_v31, %v2086_v35  ;;  %v347_v59 = vsel %vm346_vm10, %v2088_v42, %v2090_v47  ;;  %v1111_v3 = vmul.f32 %v2232_v60, %v1830_v24  ;;  %v1110_v49 = vmul.f32 %v2232_v60, %v1823_v18  ;;  %v2386_v23 = vpop.permute.xlu1 %1437 }
 0x860   :  { %v204_v16 = vadd.f32 %v198_v46, %v174_v14  ;;  %v205_v34 = vadd.f32 %v199_v9, %v175_v44  ;;  %v263_v20 = vadd.f32 %v257_v50, %v233_v7  ;;  %v348_v8 = vsel %vm346_vm10, %v2090_v47, %v1934_v32  ;;  %v2384_v47 = vpop.permute.xlu0 %1317  ;;  %v2765_v46 = vld [vmem:[#allocation15_spill] sm:$0xff]  ;;  %v2769_v50 = vld [vmem:[#allocation18_spill] sm:$0xff] }
 0x861   :  { %v349_v40 = vsel %vm346_vm10, %v1934_v32, %v2092_v58  ;;  %v377_v4 = vsel %vm376_vm11, %v2761_v11, %v2096_v56  ;;  %v378_v61 = vsel %vm376_vm11, %v2096_v56, %v2762_v63  ;;  %v1113_v0 = vmul.f32 %v2232_v60, %v1821_v17  ;;  %v2763_v32 = vld [vmem:[#allocation14_spill] sm:$0xff]  ;;  %v2766_v56 = vld [vmem:[#allocation3_spill] sm:$0xff] }
 0x862   :  { %1090 = vrot.lane.b32.xlu1 %v1081_v10, %s1773_s22  ;;  %1088 = vrot.lane.b32.xlu0 %v1080_v51, %s1773_s22  ;;  %v234_v15 = vadd.f32 %v228_v26, %v204_v16  ;;  %v235_v37 = vadd.f32 %v229_v48, %v205_v34  ;;  %v293_v53 = vadd.f32 %v287_v27, %v263_v20  ;;  %v2768_v48 = vld [vmem:[#allocation19_spill] sm:$0xff]  ;;  %vm646_vm4 = vcmask 457728  }
 0x863   :  { %v1112_v6 = vmul.f32 %v2232_v60, %v1837_v29  ;;  %v379_v58 = vsel %vm376_vm11, %v2762_v63, %v2763_v32  ;;  %v407_v9 = vsel %vm406_vm12, %v2765_v46, %v2764_v39  ;;  %v408_v25 = vsel %vm406_vm12, %v2764_v39, %v2766_v56  ;;  %v2783_v32 = vld [vmem:[#allocation30_spill] sm:$0xff] }
 0x864   :  { %v264_v19 = vadd.f32 %v258_v1, %v234_v15  ;;  %v265_v12 = vadd.f32 %v259_v54, %v235_v37  ;;  %v323_v57 = vadd.f32 %v317_v33, %v293_v53  ;;  %v1141_v10 = vmul.f32 %v2316_v21, %v1830_v24  ;;  %v2770_v54 = vld [vmem:[#allocation4_spill] sm:$0xff]  ;;  %v2772_v15 = vld [vmem:[#allocation22_spill] sm:$0xff]  ;;  %v2773_v37 = vld [vmem:[#allocation21_spill] sm:$0xff] }
 0x865   :  { %v1140_v60 = vmul.f32 %v2316_v21, %v1823_v18  ;;  %v409_v26 = vsel %vm406_vm12, %v2766_v56, %v2767_v13  ;;  %v437_v16 = vsel %vm436_vm13, %v2769_v50, %v2768_v48  ;;  %v438_v27 = vsel %vm436_vm13, %v2768_v48, %v2770_v54 }
 0x866   :  { %1094 = vrot.lane.b32.xlu1 %v1083_v55, %s1773_s22  ;;  %1092 = vrot.lane.b32.xlu0 %v1082_v2, %s1773_s22  ;;  %v294_v22 = vadd.f32 %v288_v5, %v264_v19  ;;  %v295_v52 = vadd.f32 %v289_v28, %v265_v12  ;;  %v353_v42 = vadd.f32 %v347_v59, %v323_v57  ;;  %v2771_v55 = vld [vmem:[#allocation20_spill] sm:$0xff]  ;;  %v2420_v5 = vpop.permute.xlu0 %1407  ;;  %v2422_v28 = vpop.permute.xlu1 %730  ;;  %v2774_v12 = vld [vmem:[#allocation5_spill] sm:$0xff]  ;;  %v2776_v57 = vld [vmem:[#allocation26_spill] sm:$0xff]  ;;  %vm676_vm5 = vcmask 449536  }
 0x867   :  { %v439_v2 = vsel %vm436_vm13, %v2770_v54, %v2771_v55  ;;  %v467_v20 = vsel %vm466_vm14, %v2773_v37, %v2772_v15  ;;  %v468_v53 = vsel %vm466_vm14, %v2772_v15, %v2774_v12  ;;  %v1143_v59 = vmul.f32 %v2316_v21, %v1821_v17  ;;  %v2789_v54 = vld [vmem:[#allocation35_spill] sm:$0xff] }
 0x868   :  { %v324_v31 = vadd.f32 %v318_v43, %v294_v22  ;;  %v325_v35 = vadd.f32 %v319_v30, %v295_v52  ;;  %v383_v14 = vadd.f32 %v377_v4, %v353_v42  ;;  %v2775_v43 = vld [vmem:[#allocation24_spill] sm:$0xff]  ;;  %vm706_vm6 = vcmask 441344  }
 0x869   :  { %v469_v30 = vsel %vm466_vm14, %v2774_v12, %v2775_v43  ;;  %vm736_vm7 = vcmask 433152   ;;  %vm796_vm8 = vcmask 416768   ;;  %vm766_vm9 = vcmask 424960  }
 0x86a   :  { %1120 = vrot.lane.b32.xlu1 %v1111_v3, %s1774_s23  ;;  %1118 = vrot.lane.b32.xlu0 %v1110_v49, %s1774_s23  ;;  %v354_v62 = vadd.f32 %v348_v8, %v324_v31  ;;  %v355_v51 = vadd.f32 %v349_v40, %v325_v35  ;;  %v413_v7 = vadd.f32 %v407_v9, %v383_v14  ;;  %v2777_v8 = vld [vmem:[#allocation25_spill] sm:$0xff]  ;;  %v2778_v35 = vld [vmem:[#allocation6_spill] sm:$0xff]  ;;  %v2779_v40 = vld [vmem:[#allocation27_spill] sm:$0xff]  ;;  %v2449_v39 = vpop.permute.xlu0 %732  ;;  %v2451_v46 = vpop.permute.xlu1 %734  ;;  %vm826_vm10 = vcmask 408576  }
 0x86b   :  { %v1142_v3 = vmul.f32 %v2316_v21, %v1837_v29  ;;  %v497_v31 = vsel %vm496_vm15, %v2777_v8, %v2776_v57  ;;  %v498_v42 = vsel %vm496_vm15, %v2776_v57, %v2778_v35  ;;  %v499_v11 = vsel %vm496_vm15, %v2778_v35, %v2779_v40  ;;  %v2784_v9 = vld [vmem:[#allocation50_spill] sm:$0xff]  ;;  %v2785_v14 = vld [vmem:[#allocation32_spill] sm:$0xff] }
 0x86c   :  { %v384_v44 = vadd.f32 %v378_v61, %v354_v62  ;;  %v385_v34 = vadd.f32 %v379_v58, %v355_v51  ;;  %v443_v19 = vadd.f32 %v437_v16, %v413_v7  ;;  %v2780_v61 = vld [vmem:[#allocation29_spill] sm:$0xff]  ;;  %v1171_v56 = vmul.f32 %v2784_v9, %v1830_v24  ;;  %v2795_v57 = vld [vmem:[#allocation10_spill] sm:$0xff] }
 0x86d   :  { %v2788_v7 = vld [vmem:[#allocation33_spill] sm:$0xff]  ;;  %v1173_v37 = vmul.f32 %v2784_v9, %v1821_v17  ;;  %vm856_vm11 = vcmask 261120   ;;  %vm886_vm12 = vcmask 252928   ;;  %vm916_vm13 = vcmask 244736  }
 0x86e   :  { %1124 = vrot.lane.b32.xlu1 %v1113_v0, %s1774_s23  ;;  %1122 = vrot.lane.b32.xlu0 %v1112_v6, %s1774_s23  ;;  %v414_v1 = vadd.f32 %v408_v25, %v384_v44  ;;  %v415_v33 = vadd.f32 %v409_v26, %v385_v34  ;;  %v473_v52 = vadd.f32 %v467_v20, %v443_v19  ;;  %v2781_v0 = vld [vmem:[#allocation28_spill] sm:$0xff]  ;;  %v2782_v6 = vld [vmem:[#allocation7_spill] sm:$0xff]  ;;  %vm946_vm14 = vcmask 236544  }
 0x86f   :  { %v527_v21 = vsel %vm526_vm0, %v2781_v0, %v2780_v61  ;;  %v528_v62 = vsel %vm526_vm0, %v2780_v61, %v2782_v6  ;;  %v529_v58 = vsel %vm526_vm0, %v2782_v6, %v2783_v32  ;;  %v1170_v25 = vmul.f32 %v2784_v9, %v1823_v18  ;;  %v2786_v44 = vld [vmem:[#allocation31_spill] sm:$0xff]  ;;  %v2787_v26 = vld [vmem:[#allocation8_spill] sm:$0xff] }
 0x870   :  { %v444_v49 = vadd.f32 %v438_v27, %v414_v1  ;;  %v445_v22 = vadd.f32 %v439_v2, %v415_v33  ;;  %v557_v13 = vsel %vm556_vm1, %v2786_v44, %v2785_v14  ;;  %v558_v48 = vsel %vm556_vm1, %v2785_v14, %v2787_v26  ;;  %v2790_v27 = vld [vmem:[#allocation34_spill] sm:$0xff]  ;;  %v2798_v6 = vld [vmem:[#allocation11_spill] sm:$0xff]  ;;  %v2803_v14 = vld [vmem:[#allocation44_spill] sm:$0xff] }
 0x871   :  { %v559_v1 = vsel %vm556_vm1, %v2787_v26, %v2788_v7  ;;  %v587_v55 = vsel %vm586_vm2, %v2790_v27, %v2789_v54  ;;  %v1172_v20 = vmul.f32 %v2784_v9, %v1837_v29  ;;  %v2805_v27 = vld [vmem:[#allocation43_spill] sm:$0xff]  ;;  %vm976_vm15 = vcmask 228352  }
 0x872   :  { %1150 = vrot.lane.b32.xlu1 %v1141_v10, %s1775_s24  ;;  %1148 = vrot.lane.b32.xlu0 %v1140_v60, %s1775_s24  ;;  %v474_v4 = vadd.f32 %v468_v53, %v444_v49  ;;  %v475_v63 = vadd.f32 %v469_v30, %v445_v22  ;;  %v503_v10 = vadd.f32 %v497_v31, %v473_v52  ;;  %v2791_v53 = vld [vmem:[#allocation9_spill] sm:$0xff]  ;;  %v2792_v30 = vld [vmem:[#allocation36_spill] sm:$0xff]  ;;  %v2793_v49 = vld [vmem:[#allocation38_spill] sm:$0xff]  ;;  %vm1006_vm0 = vcmask 220160  }
 0x873   :  { %v588_v43 = vsel %vm586_vm2, %v2789_v54, %v2791_v53  ;;  %v2794_v22 = vld [vmem:[#allocation37_spill] sm:$0xff]  ;;  %v618_v8 = vsel %vm616_vm3, %v2793_v49, %v2795_v57  ;;  %v2796_v31 = vld [vmem:[#allocation39_spill] sm:$0xff]  ;;  %vm1036_vm1 = vcmask 211968  }
 0x874   :  { %v504_v60 = vadd.f32 %v498_v42, %v474_v4  ;;  %v505_v51 = vadd.f32 %v499_v11, %v475_v63  ;;  %v533_v50 = vadd.f32 %v527_v21, %v503_v10  ;;  %v617_v52 = vsel %vm616_vm3, %v2794_v22, %v2793_v49  ;;  %v2797_v11 = vld [vmem:[#allocation51_spill] sm:$0xff]  ;;  %v2801_v10 = vld [vmem:[#allocation40_spill] sm:$0xff] }
 0x875   :  { %v619_v35 = vsel %vm616_vm3, %v2795_v57, %v2796_v31  ;;  %v1201_v4 = vmul.f32 %v2797_v11, %v1830_v24  ;;  %v1200_v63 = vmul.f32 %v2797_v11, %v1823_v18  ;;  %v1231_v22 = vmul.f32 %v2355_v36, %v1830_v24 }
 0x876   :  { %1154 = vrot.lane.b32.xlu1 %v1143_v59, %s1775_s24  ;;  %1152 = vrot.lane.b32.xlu0 %v1142_v3, %s1775_s24  ;;  %v534_v16 = vadd.f32 %v528_v62, %v504_v60  ;;  %v535_v34 = vadd.f32 %v529_v58, %v505_v51  ;;  %v563_v33 = vadd.f32 %v557_v13, %v533_v50  ;;  %v2799_v62 = vld [vmem:[#allocation41_spill] sm:$0xff]  ;;  %v2800_v58 = vld [vmem:[#allocation42_spill] sm:$0xff]  ;;  %v2802_v51 = vld [vmem:[#allocation12_spill] sm:$0xff]  ;;  %vm1066_vm3 = vcmask 64512  }
 0x877   :  { %v589_v59 = vsel %vm586_vm2, %v2791_v53, %v2792_v30  ;;  %v648_v32 = vsel %vm646_vm4, %v2799_v62, %v2798_v6  ;;  %v649_v9 = vsel %vm646_vm4, %v2798_v6, %v2800_v58  ;;  %v647_v60 = vsel %vm646_vm4, %v2801_v10, %v2799_v62  ;;  %v2804_v13 = vld [vmem:[#allocation45_spill] sm:$0xff]  ;;  %v2808_v53 = vld [vmem:[#allocation48_spill] sm:$0xff]  ;;  %v2809_v30 = vld [vmem:[#allocation46_spill] sm:$0xff] }
 0x878   :  { %v564_v19 = vadd.f32 %v558_v48, %v534_v16  ;;  %v565_v12 = vadd.f32 %v559_v1, %v535_v34  ;;  %v593_v3 = vadd.f32 %v587_v55, %v563_v33  ;;  %v678_v44 = vsel %vm676_vm5, %v2803_v14, %v2802_v51  ;;  %v2806_v33 = vld [vmem:[#allocation23_spill] sm:$0xff] }
 0x879   :  { %v679_v26 = vsel %vm676_vm5, %v2802_v51, %v2804_v13  ;;  %v1203_v16 = vmul.f32 %v2797_v11, %v1821_v17  ;;  %v1202_v34 = vmul.f32 %v2797_v11, %v1837_v29  ;;  %v677_v55 = vsel %vm676_vm5, %v2805_v27, %v2803_v14 }
 0x87a   :  { %1180 = vrot.lane.b32.xlu1 %v1171_v56, %s1776_s25  ;;  %1178 = vrot.lane.b32.xlu0 %v1170_v25, %s1776_s25  ;;  %v594_v61 = vadd.f32 %v588_v43, %v564_v19  ;;  %v595_v0 = vadd.f32 %v589_v59, %v565_v12  ;;  %v623_v21 = vadd.f32 %v617_v52, %v593_v3  ;;  %v2807_v19 = vld [vmem:[#allocation47_spill] sm:$0xff]  ;;  %vm1096_vm4 = vcmask 56320  }
 0x87b   :  { %v708_v12 = vsel %vm706_vm6, %v2807_v19, %v2806_v33  ;;  %v709_v43 = vsel %vm706_vm6, %v2806_v33, %v2808_v53  ;;  %v707_v59 = vsel %vm706_vm6, %v2809_v30, %v2807_v19  ;;  %v1230_v52 = vmul.f32 %v2355_v36, %v1823_v18  ;;  %v2810_v18 = vld [vmem:[#allocation49_spill] sm:$0xff] }
 0x87c   :  { %v2469_v2 = vpop.permute.xlu0 %758  ;;  %v2471_v15 = vpop.permute.xlu1 %760  ;;  %v624_v56 = vadd.f32 %v618_v8, %v594_v61  ;;  %v625_v25 = vadd.f32 %v619_v35, %v595_v0  ;;  %v653_v54 = vadd.f32 %v647_v60, %v623_v21  ;;  %v738_v8 = vsel %vm736_vm7, %v2422_v28, %v2449_v39  ;;  %v2811_v60 = vld [vmem:[#allocation52_spill] sm:$0xff] }
 0x87d   :  { %v739_v31 = vsel %vm736_vm7, %v2449_v39, %v2451_v46  ;;  %v737_v61 = vsel %vm736_vm7, %v2810_v18, %v2422_v28  ;;  %v1232_v58 = vmul.f32 %v2355_v36, %v1837_v29  ;;  %v1261_v51 = vmul.f32 %v2811_v60, %v1837_v29 }
 0x87e   :  { %1184 = vrot.lane.b32.xlu1 %v1173_v37, %s1776_s25  ;;  %1182 = vrot.lane.b32.xlu0 %v1172_v20, %s1776_s25  ;;  %v654_v7 = vadd.f32 %v648_v32, %v624_v56  ;;  %v655_v1 = vadd.f32 %v649_v9, %v625_v25  ;;  %v683_v57 = vadd.f32 %v677_v55, %v653_v54  ;;  %vm1126_vm5 = vcmask 48128  }
 0x87f   :  { %v1233_v32 = vmul.f32 %v2355_v36, %v1821_v17  ;;  %v767_v9 = vsel %vm766_vm9, %v2469_v2, %v2471_v15  ;;  %v2556_v36 = vld [vmem:[%s2682_s0 + $0x20] sm:$0xff]  ;;  %v1290_v30 = vmul.f32 %v2285_v41, %v1830_v24  ;;  %v1321_v18 = vmul.f32 %v2384_v47, %v1837_v29 }
 0x880   :  { %v763_v42 = vpop.permute.xlu0 %762  ;;  %v765_v40 = vpop.permute.xlu1 %764  ;;  %v684_v37 = vadd.f32 %v678_v44, %v654_v7  ;;  %v685_v20 = vadd.f32 %v679_v26, %v655_v1  ;;  %v2559_v2 = vmax.f32 %v2556_v36, 0.0  ;;  %vm1156_vm6 = vcmask 39936  }
 0x881   :  { %v768_v0 = vsel %vm766_vm9, %v2471_v15, %v763_v42  ;;  %v769_v21 = vsel %vm766_vm9, %v763_v42, %v765_v40  ;;  %vm1216_vm9 = vcmask 23552  }
 0x882   :  { %1210 = vrot.lane.b32.xlu1 %v1201_v4, %s1777_s26  ;;  %1208 = vrot.lane.b32.xlu0 %v1200_v63, %s1777_s26  ;;  %v714_v11 = vadd.f32 %v708_v12, %v684_v37  ;;  %v715_v4 = vadd.f32 %v709_v43, %v685_v20  ;;  %v713_v63 = vadd.f32 %v707_v59, %v683_v57 }
 0x883   :  { %v1263_v37 = vmul.f32 %v2811_v60, %v2559_v2  ;;  %v1262_v20 = vmul.f32 %v2811_v60, %v1821_v17  ;;  %v1291_v43 = vmul.f32 %v2285_v41, %v1837_v29 }
 0x884   :  { %v789_v48 = vpop.permute.xlu0 %788  ;;  %v791_v50 = vpop.permute.xlu1 %790  ;;  %v744_v6 = vadd.f32 %v738_v8, %v714_v11  ;;  %v745_v62 = vadd.f32 %v739_v31, %v715_v4  ;;  %v743_v25 = vadd.f32 %v737_v61, %v713_v63  ;;  %v1293_v8 = vmul.f32 %v2285_v41, %v2559_v2 }
 0x885   :  { %v797_v40 = vsel %vm796_vm8, %v789_v48, %v791_v50  ;;  %v1292_v31 = vmul.f32 %v2285_v41, %v1821_v17  ;;  %v1320_v61 = vmul.f32 %v2384_v47, %v1830_v24 }
 0x886   :  { %1214 = vrot.lane.b32.xlu1 %v1203_v16, %s1777_s26  ;;  %1212 = vrot.lane.b32.xlu0 %v1202_v34, %s1777_s26  ;;  %v774_v10 = vadd.f32 %v768_v0, %v744_v6  ;;  %v775_v42 = vadd.f32 %v769_v21, %v745_v62  ;;  %v773_v15 = vadd.f32 %v767_v9, %v743_v25 }
 0x887   :  { %v1260_v16 = vmul.f32 %v2811_v60, %v1830_v24  ;;  %v1351_v25 = vmul.f32 %v2318_v38, %v1837_v29 }
 0x888   :  { %v793_v3 = vpop.permute.xlu0 %792  ;;  %v795_v49 = vpop.permute.xlu1 %794  ;;  %v803_v34 = vadd.f32 %v797_v40, %v773_v15 }
 0x889   :  { %v799_v35 = vsel %vm796_vm8, %v793_v3, %v795_v49  ;;  %v798_v56 = vsel %vm796_vm8, %v791_v50, %v793_v3  ;;  %vm1186_vm8 = vcmask 31744  }
 0x88a   :  { %1240 = vrot.lane.b32.xlu1 %v1231_v22, %s1778_s27  ;;  %1238 = vrot.lane.b32.xlu0 %v1230_v52, %s1778_s27  ;;  %v804_v14 = vadd.f32 %v798_v56, %v774_v10  ;;  %v805_v44 = vadd.f32 %v799_v35, %v775_v42  ;;  %v1350_v10 = vmul.f32 %v2318_v38, %v1830_v24 }
 0x88c   :  { %v819_v39 = vpop.permute.xlu0 %818  ;;  %v821_v46 = vpop.permute.xlu1 %820 }
 0x88d   :  { %v827_v28 = vsel %vm826_vm10, %v819_v39, %v821_v46 }
 0x88e   :  { %1244 = vrot.lane.b32.xlu1 %v1233_v32, %s1778_s27  ;;  %1242 = vrot.lane.b32.xlu0 %v1232_v58, %s1778_s27  ;;  %v833_v54 = vadd.f32 %v827_v28, %v803_v34  ;;  %v1322_v32 = vmul.f32 %v2384_v47, %v1821_v17  ;;  %v1380_v34 = vmul.f32 %v2357_v45, %v1830_v24 }
 0x890   :  { %v823_v13 = vpop.permute.xlu0 %822  ;;  %v825_v26 = vpop.permute.xlu1 %824 }
 0x891   :  { %v828_v48 = vsel %vm826_vm10, %v821_v46, %v823_v13  ;;  %v829_v50 = vsel %vm826_vm10, %v823_v13, %v825_v26  ;;  %v1323_v46 = vmul.f32 %v2384_v47, %v2559_v2  ;;  %vm1246_vm10 = vcmask 15360  }
 0x892   :  { %v834_v7 = vadd.f32 %v828_v48, %v804_v14  ;;  %v835_v1 = vadd.f32 %v829_v50, %v805_v44  ;;  %1270 = vrot.lane.b32.xlu1 %v1261_v51, %s1779_s30  ;;  %1268 = vrot.lane.b32.xlu0 %v1260_v16, %s1779_s30  ;;  %v1353_v14 = vmul.f32 %v2318_v38, %v2559_v2 }
 0x893   :  { %v1352_v44 = vmul.f32 %v2318_v38, %v1821_v17  ;;  %v1381_v50 = vmul.f32 %v2357_v45, %v1837_v29 }
 0x894   :  { %v849_v27 = vpop.permute.xlu0 %848  ;;  %v851_v55 = vpop.permute.xlu1 %850 }
 0x895   :  { %v857_v33 = vsel %vm856_vm11, %v849_v27, %v851_v55 }
 0x896   :  { %v863_v19 = vadd.f32 %v857_v33, %v833_v54  ;;  %1274 = vrot.lane.b32.xlu1 %v1263_v37, %s1779_s30  ;;  %1272 = vrot.lane.b32.xlu0 %v1262_v20, %s1779_s30  ;;  %v1383_v37 = vmul.f32 %v2357_v45, %v2559_v2  ;;  %v1382_v20 = vmul.f32 %v2357_v45, %v1821_v17 }
 0x898   :  { %v853_v12 = vpop.permute.xlu0 %852  ;;  %v855_v53 = vpop.permute.xlu1 %854 }
 0x899   :  { %v858_v59 = vsel %vm856_vm11, %v851_v55, %v853_v12  ;;  %v859_v3 = vsel %vm856_vm11, %v853_v12, %v855_v53  ;;  %vm1276_vm11 = vcmask 916480  }
 0x89a   :  { %v864_v49 = vadd.f32 %v858_v59, %v834_v7  ;;  %v865_v22 = vadd.f32 %v859_v3, %v835_v1  ;;  %1300 = vrot.lane.b32.xlu1 %v1291_v43, %s1780_s2  ;;  %1298 = vrot.lane.b32.xlu0 %v1290_v30, %s1780_s2  ;;  %v1410_v43 = vmul.f32 %v2420_v5, %v1830_v24 }
 0x89c   :  { %v879_v52 = vpop.permute.xlu0 %878  ;;  %v881_v57 = vpop.permute.xlu1 %880 }
 0x89d   :  { %v887_v35 = vsel %vm886_vm12, %v879_v52, %v881_v57  ;;  %v1411_v52 = vmul.f32 %v2420_v5, %v1837_v29 }
 0x89e   :  { %v893_v11 = vadd.f32 %v887_v35, %v863_v19  ;;  %1304 = vrot.lane.b32.xlu1 %v1293_v8, %s1780_s2  ;;  %1302 = vrot.lane.b32.xlu0 %v1292_v31, %s1780_s2 }
 0x8a0   :  { %v883_v4 = vpop.permute.xlu0 %882  ;;  %v885_v63 = vpop.permute.xlu1 %884 }
 0x8a1   :  { %v888_v0 = vsel %vm886_vm12, %v881_v57, %v883_v4  ;;  %v889_v21 = vsel %vm886_vm12, %v883_v4, %v885_v63  ;;  %v1412_v57 = vmul.f32 %v2420_v5, %v1821_v17  ;;  %v1440_v4 = vmul.f32 %v2386_v23, %v1830_v24 }
 0x8a2   :  { %v894_v6 = vadd.f32 %v888_v0, %v864_v49  ;;  %v895_v62 = vadd.f32 %v889_v21, %v865_v22  ;;  %1330 = vrot.lane.b32.xlu1 %v1321_v18, %s1781_s3  ;;  %1328 = vrot.lane.b32.xlu0 %v1320_v61, %s1781_s3  ;;  %vm1306_vm12 = vcmask 908288  }
 0x8a4   :  { %v909_v41 = vpop.permute.xlu0 %908  ;;  %v911_v39 = vpop.permute.xlu1 %910 }
 0x8a5   :  { %v917_v58 = vsel %vm916_vm13, %v909_v41, %v911_v39  ;;  %v1441_v41 = vmul.f32 %v2386_v23, %v1837_v29 }
 0x8a6   :  { %v923_v9 = vadd.f32 %v917_v58, %v893_v11  ;;  %1334 = vrot.lane.b32.xlu1 %v1323_v46, %s1781_s3  ;;  %1332 = vrot.lane.b32.xlu0 %v1322_v32, %s1781_s3  ;;  %v1443_v32 = vmul.f32 %v2386_v23, %v2559_v2 }
 0x8a8   :  { %v913_v56 = vpop.permute.xlu0 %912  ;;  %v915_v28 = vpop.permute.xlu1 %914 }
 0x8a9   :  { %v918_v42 = vsel %vm916_vm13, %v911_v39, %v913_v56  ;;  %v919_v40 = vsel %vm916_vm13, %v913_v56, %v915_v28  ;;  %vm1336_vm13 = vcmask 900096  }
 0x8aa   :  { %v924_v60 = vadd.f32 %v918_v42, %v894_v6  ;;  %v925_v51 = vadd.f32 %v919_v40, %v895_v62  ;;  %1360 = vrot.lane.b32.xlu1 %v1351_v25, %s1782_s4  ;;  %1358 = vrot.lane.b32.xlu0 %v1350_v10, %s1782_s4  ;;  %v1442_v62 = vmul.f32 %v2386_v23, %v1821_v17 }
 0x8ac   :  { %v939_v47 = vpop.permute.xlu0 %938  ;;  %v941_v15 = vpop.permute.xlu1 %940 }
 0x8ad   :  { %v947_v13 = vsel %vm946_vm14, %v939_v47, %v941_v15 }
 0x8ae   :  { %v953_v26 = vadd.f32 %v947_v13, %v923_v9  ;;  %1364 = vrot.lane.b32.xlu1 %v1353_v14, %s1782_s4  ;;  %1362 = vrot.lane.b32.xlu0 %v1352_v44, %s1782_s4 }
 0x8b0   :  { %v943_v16 = vpop.permute.xlu0 %942  ;;  %v945_v48 = vpop.permute.xlu1 %944 }
 0x8b1   :  { %v948_v7 = vsel %vm946_vm14, %v941_v15, %v943_v16  ;;  %v949_v1 = vsel %vm946_vm14, %v943_v16, %v945_v48  ;;  %vm1366_vm14 = vcmask 891904  }
 0x8b2   :  { %v954_v54 = vadd.f32 %v948_v7, %v924_v60  ;;  %v955_v27 = vadd.f32 %v949_v1, %v925_v51  ;;  %1390 = vrot.lane.b32.xlu1 %v1381_v50, %s1783_s6  ;;  %1388 = vrot.lane.b32.xlu0 %v1380_v34, %s1783_s6 }
 0x8b4   :  { %v969_v38 = vpop.permute.xlu0 %968  ;;  %v971_v55 = vpop.permute.xlu1 %970 }
 0x8b5   :  { %v977_v33 = vsel %vm976_vm15, %v969_v38, %v971_v55 }
 0x8b6   :  { %v983_v19 = vadd.f32 %v977_v33, %v953_v26  ;;  %1394 = vrot.lane.b32.xlu1 %v1383_v37, %s1783_s6  ;;  %1392 = vrot.lane.b32.xlu0 %v1382_v20, %s1783_s6 }
 0x8b8   :  { %v973_v12 = vpop.permute.xlu0 %972  ;;  %v975_v53 = vpop.permute.xlu1 %974 }
 0x8b9   :  { %v978_v30 = vsel %vm976_vm15, %v971_v55, %v973_v12  ;;  %v979_v59 = vsel %vm976_vm15, %v973_v12, %v975_v53  ;;  %vm1396_vm15 = vcmask 883712  }
 0x8ba   :  { %v984_v3 = vadd.f32 %v978_v30, %v954_v54  ;;  %v985_v49 = vadd.f32 %v979_v59, %v955_v27  ;;  %1418 = vrot.lane.b32.xlu1 %v1410_v43, %s1784_s7  ;;  %1467 = vperm.xlu0 %1676, %v2556_v36   ;;  %v1413_v36 = vmul.f32 %v2420_v5, %v2559_v2 }
 0x8bc   :  { %v999_v22 = vpop.permute.xlu0 %998  ;;  %v1001_v45 = vpop.permute.xlu1 %1000 }
 0x8bd   :  { %v1007_v8 = vsel %vm1006_vm0, %v999_v22, %v1001_v45 }
 0x8be   :  { %v1013_v31 = vadd.f32 %v1007_v8, %v983_v19  ;;  %1420 = vrot.lane.b32.xlu1 %v1411_v52, %s1784_s7  ;;  %1422 = vrot.lane.b32.xlu0 %v1412_v57, %s1784_s7 }
 0x8c0   :  { %v1003_v35 = vpop.permute.xlu0 %1002  ;;  %v1005_v11 = vpop.permute.xlu1 %1004 }
 0x8c1   :  { %v1008_v63 = vsel %vm1006_vm0, %v1001_v45, %v1003_v35  ;;  %v1009_v18 = vsel %vm1006_vm0, %v1003_v35, %v1005_v11  ;;  %vm1426_vm0 = vcmask 875520  }
 0x8c2   :  { %v1014_v61 = vadd.f32 %v1008_v63, %v984_v3  ;;  %v1015_v0 = vadd.f32 %v1009_v18, %v985_v49  ;;  %1448 = vrot.lane.b32.xlu0 %v1440_v4, %s1785_s8  ;;  %1424 = vrot.lane.b32.xlu1 %v1413_v36, %s1784_s7 }
 0x8c4   :  { %v1029_v21 = vpop.permute.xlu0 %1028  ;;  %v1031_v6 = vpop.permute.xlu1 %1030 }
 0x8c5   :  { %v1037_v24 = vsel %vm1036_vm1, %v1029_v21, %v1031_v6 }
 0x8c6   :  { %v1043_v39 = vadd.f32 %v1037_v24, %v1013_v31  ;;  %1452 = vrot.lane.b32.xlu0 %v1442_v62, %s1785_s8  ;;  %1450 = vrot.lane.b32.xlu1 %v1441_v41, %s1785_s8 }
 0x8c8   :  { %v1033_v5 = vpop.permute.xlu0 %1032  ;;  %v1035_v46 = vpop.permute.xlu1 %1034 }
 0x8c9   :  { %v1038_v58 = vsel %vm1036_vm1, %v1031_v6, %v1033_v5  ;;  %v1039_v9 = vsel %vm1036_vm1, %v1033_v5, %v1035_v46  ;;  %vm1456_vm1 = vcmask 867328  }
 0x8ca   :  { %v1044_v56 = vadd.f32 %v1038_v58, %v1014_v61  ;;  %v1045_v28 = vadd.f32 %v1039_v9, %v1015_v0  ;;  %1454 = vrot.lane.b32.xlu1 %v1443_v32, %s1785_s8 }
 0x8cc   :  { %v1059_v25 = vpop.permute.xlu0 %1058  ;;  %v1061_v17 = vpop.permute.xlu1 %1060 }
 0x8cd   :  { %v1067_v10 = vsel %vm1066_vm3, %v1059_v25, %v1061_v17 }
 0x8ce   :  { %v1073_v42 = vadd.f32 %v1067_v10, %v1043_v39 }
 0x8d0   :  { %v1063_v29 = vpop.permute.xlu0 %1062  ;;  %v1065_v40 = vpop.permute.xlu1 %1064 }
 0x8d1   :  { %v1068_v60 = vsel %vm1066_vm3, %v1061_v17, %v1063_v29  ;;  %v1069_v51 = vsel %vm1066_vm3, %v1063_v29, %v1065_v40 }
 0x8d2   :  { %v1074_v47 = vadd.f32 %v1068_v60, %v1044_v56  ;;  %v1075_v15 = vadd.f32 %v1069_v51, %v1045_v28 }
 0x8d4   :  { %v1089_v14 = vpop.permute.xlu0 %1088  ;;  %v1091_v44 = vpop.permute.xlu1 %1090 }
 0x8d5   :  { %v1097_v23 = vsel %vm1096_vm4, %v1089_v14, %v1091_v44 }
 0x8d6   :  { %v1103_v2 = vadd.f32 %v1097_v23, %v1073_v42 }
 0x8d8   :  { %v1093_v13 = vpop.permute.xlu0 %1092  ;;  %v1095_v26 = vpop.permute.xlu1 %1094 }
 0x8d9   :  { %v1098_v16 = vsel %vm1096_vm4, %v1091_v44, %v1093_v13  ;;  %v1099_v48 = vsel %vm1096_vm4, %v1093_v13, %v1095_v26 }
 0x8da   :  { %v1104_v50 = vadd.f32 %v1098_v16, %v1074_v47  ;;  %v1105_v34 = vadd.f32 %v1099_v48, %v1075_v15 }
 0x8dc   :  { %v1119_v7 = vpop.permute.xlu0 %1118  ;;  %v1121_v1 = vpop.permute.xlu1 %1120 }
 0x8dd   :  { %v1127_v54 = vsel %vm1126_vm5, %v1119_v7, %v1121_v1 }
 0x8de   :  { %v1133_v27 = vadd.f32 %v1127_v54, %v1103_v2 }
 0x8e0   :  { %v1123_v38 = vpop.permute.xlu0 %1122  ;;  %v1125_v55 = vpop.permute.xlu1 %1124 }
 0x8e1   :  { %v1128_v37 = vsel %vm1126_vm5, %v1121_v1, %v1123_v38  ;;  %v1129_v20 = vsel %vm1126_vm5, %v1123_v38, %v1125_v55 }
 0x8e2   :  { %v1134_v33 = vadd.f32 %v1128_v37, %v1104_v50  ;;  %v1135_v19 = vadd.f32 %v1129_v20, %v1105_v34 }
 0x8e4   :  { %v1149_v12 = vpop.permute.xlu0 %1148  ;;  %v1151_v53 = vpop.permute.xlu1 %1150 }
 0x8e5   :  { %v1157_v43 = vsel %vm1156_vm6, %v1149_v12, %v1151_v53 }
 0x8e6   :  { %v1163_v30 = vadd.f32 %v1157_v43, %v1133_v27 }
 0x8e8   :  { %v1153_v59 = vpop.permute.xlu0 %1152  ;;  %v1155_v3 = vpop.permute.xlu1 %1154 }
 0x8e9   :  { %v1158_v49 = vsel %vm1156_vm6, %v1151_v53, %v1153_v59  ;;  %v1159_v22 = vsel %vm1156_vm6, %v1153_v59, %v1155_v3 }
 0x8ea   :  { %v1164_v45 = vadd.f32 %v1158_v49, %v1134_v33  ;;  %v1165_v52 = vadd.f32 %v1159_v22, %v1135_v19 }
 0x8ec   :  { %v1179_v57 = vpop.permute.xlu0 %1178  ;;  %v1181_v8 = vpop.permute.xlu1 %1180 }
 0x8ed   :  { %v1187_v51 = vsel %vm1186_vm8, %v1179_v57, %v1181_v8 }
 0x8ee   :  { %v1193_v14 = vadd.f32 %v1187_v51, %v1163_v30 }
 0x8f0   :  { %v1183_v31 = vpop.permute.xlu0 %1182  ;;  %v1185_v35 = vpop.permute.xlu1 %1184 }
 0x8f1   :  { %v1188_v44 = vsel %vm1186_vm8, %v1181_v8, %v1183_v31  ;;  %v1189_v23 = vsel %vm1186_vm8, %v1183_v31, %v1185_v35 }
 0x8f2   :  { %v1194_v34 = vadd.f32 %v1188_v44, %v1164_v45  ;;  %v1195_v7 = vadd.f32 %v1189_v23, %v1165_v52 }
 0x8f4   :  { %v1209_v11 = vpop.permute.xlu0 %1208  ;;  %v1211_v4 = vpop.permute.xlu1 %1210 }
 0x8f5   :  { %v1217_v15 = vsel %vm1216_vm9, %v1209_v11, %v1211_v4 }
 0x8f6   :  { %v1223_v13 = vadd.f32 %v1217_v15, %v1193_v14 }
 0x8f8   :  { %v1213_v36 = vpop.permute.xlu0 %1212  ;;  %v1215_v63 = vpop.permute.xlu1 %1214 }
 0x8f9   :  { %v1218_v16 = vsel %vm1216_vm9, %v1211_v4, %v1213_v36  ;;  %v1219_v48 = vsel %vm1216_vm9, %v1213_v36, %v1215_v63 }
 0x8fa   :  { %v1224_v37 = vadd.f32 %v1218_v16, %v1194_v34  ;;  %v1225_v20 = vadd.f32 %v1219_v48, %v1195_v7 }
 0x8fc   :  { %v1239_v18 = vpop.permute.xlu0 %1238  ;;  %v1241_v61 = vpop.permute.xlu1 %1240 }
 0x8fd   :  { %v1247_v2 = vsel %vm1246_vm10, %v1239_v18, %v1241_v61 }
 0x8fe   :  { %v1253_v1 = vadd.f32 %v1247_v2, %v1223_v13 }
 0x900   :  { %v1243_v0 = vpop.permute.xlu0 %1242  ;;  %v1245_v21 = vpop.permute.xlu1 %1244 }
 0x901   :  { %v1248_v27 = vsel %vm1246_vm10, %v1241_v61, %v1243_v0  ;;  %v1249_v38 = vsel %vm1246_vm10, %v1243_v0, %v1245_v21 }
 0x902   :  { %v1254_v43 = vadd.f32 %v1248_v27, %v1224_v37  ;;  %v1255_v30 = vadd.f32 %v1249_v38, %v1225_v20 }
 0x904   :  { %v1269_v6 = vpop.permute.xlu0 %1268  ;;  %v1271_v62 = vpop.permute.xlu1 %1270 }
 0x905   :  { %v1277_v50 = vsel %vm1276_vm11, %v1269_v6, %v1271_v62 }
 0x906   :  { %v1283_v33 = vadd.f32 %v1277_v50, %v1253_v1 }
 0x908   :  { %v1273_v41 = vpop.permute.xlu0 %1272  ;;  %v1275_v24 = vpop.permute.xlu1 %1274 }
 0x909   :  { %v1278_v19 = vsel %vm1276_vm11, %v1271_v62, %v1273_v41  ;;  %v1279_v12 = vsel %vm1276_vm11, %v1273_v41, %v1275_v24 }
 0x90a   :  { %v1284_v57 = vadd.f32 %v1278_v19, %v1254_v43  ;;  %v1285_v8 = vadd.f32 %v1279_v12, %v1255_v30  ;;  %v1684_v19 = vld [vmem:[%s2682_s0] sm:$0xff] }
 0x90c   :  { %v1299_v39 = vpop.permute.xlu0 %1298  ;;  %v1301_v5 = vpop.permute.xlu1 %1300 }
 0x90d   :  { %v1307_v55 = vsel %vm1306_vm12, %v1299_v39, %v1301_v5 }
 0x90e   :  { %v1313_v59 = vadd.f32 %v1307_v55, %v1283_v33 }
 0x910   :  { %v1305_v46 = vpop.permute.xlu1 %1304  ;;  %v1303_v32 = vpop.permute.xlu0 %1302 }
 0x911   :  { %v1308_v22 = vsel %vm1306_vm12, %v1301_v5, %v1303_v32  ;;  %v1309_v45 = vsel %vm1306_vm12, %v1303_v32, %v1305_v46 }
 0x912   :  { %v1314_v36 = vadd.f32 %v1308_v22, %v1284_v57  ;;  %v1315_v63 = vadd.f32 %v1309_v45, %v1285_v8  ;;  %v1686_v22 = vld [vmem:[%s2682_s0 + $0x10] sm:$0xff] }
 0x914   :  { %v1331_v58 = vpop.permute.xlu1 %1330  ;;  %v1329_v9 = vpop.permute.xlu0 %1328 }
 0x915   :  { %v1337_v53 = vsel %vm1336_vm13, %v1329_v9, %v1331_v58 }
 0x916   :  { %v1343_v31 = vadd.f32 %v1337_v53, %v1313_v59  ;;  %v1685_v59 = vld [vmem:[%s2682_s0 + $0x8] sm:$0xff] }
 0x918   :  { %v1335_v56 = vpop.permute.xlu1 %1334  ;;  %v1333_v25 = vpop.permute.xlu0 %1332 }
 0x919   :  { %v1338_v35 = vsel %vm1336_vm13, %v1331_v58, %v1333_v25  ;;  %v1339_v11 = vsel %vm1336_vm13, %v1333_v25, %v1335_v56 }
 0x91a   :  { %v1344_v62 = vadd.f32 %v1338_v35, %v1314_v36  ;;  %v1345_v41 = vadd.f32 %v1339_v11, %v1315_v63 }
 0x91c   :  { %v1361_v28 = vpop.permute.xlu1 %1360  ;;  %v1359_v10 = vpop.permute.xlu0 %1358 }
 0x91d   :  { %v1367_v52 = vsel %vm1366_vm14, %v1359_v10, %v1361_v28 }
 0x91e   :  { %v1373_v18 = vadd.f32 %v1367_v52, %v1343_v31  ;;  %v1687_v52 = vld [vmem:[%s2682_s0 + $0x18] sm:$0xff] }
 0x920   :  { %v1365_v17 = vpop.permute.xlu1 %1364  ;;  %v1363_v40 = vpop.permute.xlu0 %1362 }
 0x921   :  { %v1368_v0 = vsel %vm1366_vm14, %v1361_v28, %v1363_v40  ;;  %v1369_v21 = vsel %vm1366_vm14, %v1363_v40, %v1365_v17 }
 0x922   :  { %v1374_v32 = vadd.f32 %v1368_v0, %v1344_v62  ;;  %v1375_v58 = vadd.f32 %v1369_v21, %v1345_v41 }
 0x924   :  { %v2618_v42 = vpop.permute.xlu1 %1390  ;;  %v1389_v47 = vpop.permute.xlu0 %1388 }
 0x925   :  { %v1397_v4 = vsel %vm1396_vm15, %v1389_v47, %v2618_v42 }
 0x926   :  { %v1403_v24 = vadd.f32 %v1397_v4, %v1373_v18 }
 0x928   :  { %v2620_v29 = vpop.permute.xlu1 %1394  ;;  %v1393_v54 = vpop.permute.xlu0 %1392 }
 0x929   :  { %v1398_v5 = vsel %vm1396_vm15, %v2618_v42, %v1393_v54  ;;  %v1399_v46 = vsel %vm1396_vm15, %v1393_v54, %v2620_v29 }
 0x92a   :  { %v1404_v10 = vadd.f32 %v1398_v5, %v1374_v32  ;;  %v1405_v40 = vadd.f32 %v1399_v46, %v1375_v58 }
 0x92c   :  { %v1419_v60 = vpop.permute.xlu1 %1418 }
 0x930   :  { %v1421_v26 = vpop.permute.xlu1 %1420 }
 0x931   :  { %v1427_v6 = vsel %vm1426_vm0, %v1419_v60, %v1421_v26 }
 0x932   :  { %v1433_v9 = vadd.f32 %v1427_v6, %v1403_v24 }
 0x934   :  { %v1425_v3 = vpop.permute.xlu1 %1424 }
 0x938   :  { %v1451_v39 = vpop.permute.xlu1 %1450 }
 0x939   :  { %v1468_v49 = vpop.permute.xlu0 %1467 }
 0x93c   :  { %v1455_v51 = vpop.permute.xlu1 %1454 }
 0x93d   :  { %v1423_v61 = vpop.permute.xlu0 %1422 }
 0x93e   :  { %v1428_v28 = vsel %vm1426_vm0, %v1421_v26, %v1423_v61  ;;  %v1429_v25 = vsel %vm1426_vm0, %v1423_v61, %v1425_v3 }
 0x93f   :  { %v1434_v47 = vadd.f32 %v1428_v28, %v1404_v10  ;;  %v1435_v15 = vadd.f32 %v1429_v25, %v1405_v40 }
 0x941   :  { %v1449_v56 = vpop.permute.xlu0 %1448 }
 0x942   :  { %v1457_v17 = vsel %vm1456_vm1, %v1449_v56, %v1451_v39 }
 0x943   :  { %v1463_v60 = vadd.f32 %v1457_v17, %v1433_v9 }
 0x945   :  { %v1470_v42 = vadd.f32 %v1468_v49, %v1463_v60  ;;  %v1453_v14 = vpop.permute.xlu0 %1452 }
 0x946   :  { %v1458_v29 = vsel %vm1456_vm1, %v1451_v39, %v1453_v14  ;;  %v1459_v44 = vsel %vm1456_vm1, %v1453_v14, %v1455_v51 }
 0x947   :  { %v1473_v23 = vmul.f32 0.5, %v1470_v42  ;;  %v1464_v2 = vadd.f32 %v1458_v29, %v1434_v47  ;;  %v1465_v13 = vadd.f32 %v1459_v44, %v1435_v15 }
 0x949   :  { %1677 = vtanh.f32 %v1473_v23  ;;  %v1471_v26 = vadd.f32 %v1468_v49, %v1464_v2  ;;  %v1472_v16 = vadd.f32 %v1468_v49, %v1465_v13 }
 0x94b   :  { %v1474_v48 = vmul.f32 0.5, %v1471_v26  ;;  %v1475_v50 = vmul.f32 0.5, %v1472_v16 }
 0x94d   :  { %1679 = vtanh.f32 %v1474_v48 }
 0x94e   :  { %1681 = vtanh.f32 %v1475_v50 }
 0x953   :  { %v1678_v34 = vpop.eup %1677 }
 0x954   :  { %v1479_v7 = vmul.f32 0.5, %v1678_v34 }
 0x956   :  { %v1482_v1 = vadd.f32 0.5, %v1479_v7 }
 0x957   :  { %v1680_v54 = vpop.eup %1679 }
 0x958   :  { %v1682_v27 = vpop.eup %1681  ;;  %1488 = vrot.lane.b32.xlu0 %v1482_v1, %s1727_s5  ;;  %v1480_v38 = vmul.f32 0.5, %v1680_v54 }
 0x959   :  { %v1481_v55 = vmul.f32 0.5, %v1682_v27 }
 0x95a   :  { %v1483_v37 = vadd.f32 0.5, %v1480_v38 }
 0x95b   :  { %v1484_v20 = vadd.f32 0.5, %v1481_v55 }
 0x95c   :  { %1490 = vrot.lane.b32.xlu1 %v1483_v37, %s1727_s5 }
 0x95d   :  { %1492 = vrot.lane.b32.xlu0 %v1484_v20, %s1727_s5 }
 0x9ca   :  { %v1489_v33 = vpop.permute.xlu0 %1488 }
 0x9cb   :  { %v1500_v12 = vmul.f32 %v1684_v19, %v1489_v33 }
 0x9cd   :  { %1508 = vrot.lane.b32.xlu1 %v1500_v12, %s1745_s10 }
 0x9ce   :  { %v1491_v53 = vpop.permute.xlu1 %1490 }
 0x9cf   :  { %v1494_v43 = vsel %vm586_vm2, %v1489_v33, %v1491_v53  ;;  %v1493_v30 = vpop.permute.xlu0 %1492 }
 0x9d0   :  { %v1501_v3 = vmul.f32 %v1685_v59, %v1494_v43  ;;  %v1495_v49 = vsel %vm586_vm2, %v1491_v53, %v1493_v30  ;;  %v1503_v57 = vmul.f32 %v1687_v52, %v1493_v30 }
 0x9d1   :  { %v1502_v45 = vmul.f32 %v1686_v22, %v1495_v49 }
 0x9d2   :  { %1510 = vrot.lane.b32.xlu0 %v1501_v3, %s1745_s10 }
 0x9d3   :  { %1512 = vrot.lane.b32.xlu1 %v1502_v45, %s1745_s10 }
 0x9d6   :  { %1514 = vrot.lane.b32.xlu0 %v1503_v57, %s1745_s10 }
 0xa3f   :  { %v1509_v8 = vpop.permute.xlu1 %1508 }
 0xa44   :  { %v1511_v31 = vpop.permute.xlu0 %1510 }
 0xa45   :  { %v1513_v35 = vpop.permute.xlu1 %1512  ;;  %v1516_v11 = vsel %vm736_vm7, %v1509_v8, %v1511_v31 }
 0xa46   :  { %v1517_v4 = vsel %vm736_vm7, %v1511_v31, %v1513_v35  ;;  %1522 = vst [vmem:[%s2683_s1] sm:$0xff] %v1516_v11 }
 0xa47   :  { %1523 = vst [vmem:[%s2683_s1 + $0x8] sm:$0xff] %v1517_v4 }
 0xa48   :  { %v1515_v36 = vpop.permute.xlu0 %1514 }
 0xa49   :  { %v1518_v63 = vsel %vm736_vm7, %v1513_v35, %v1515_v36 }
 0xa4a   :  { %1524 = vst [vmem:[%s2683_s1 + $0x10] sm:$0xff] %v1518_v63 }

</bundles_post_ra>
